<compile_context>
chip_gen: v5e
topology: v5e:2x2
jax: 0.10.0
libtpu: 0.0.40
codegen_flags: <defaults>
</compile_context>

<pallas_src>
import math
from functools import partial

import numpy as np
import jax
import jax.numpy as jnp
from jax.experimental import pallas as pl
from jax.experimental.pallas import tpu as pltpu

# Small synthetic config (real ViT-H-14 text tower: L=24, D=1024, H=16, S=77, V=49408)
B = 2                       # batch
S = 7                       # max_length (77 real); 7 exercises the sequence-padding path
SP = ((S + 7) // 8) * 8     # sequence padded to a sublane multiple
                            # TODO(synk): pad to 128 at real S=77 for lane-dense softmax rows.
D = 64                      # transformer width
H = 4                       # attention heads
HD = D // H                 # head dim
MLP = 4 * D                 # FFN hidden width
FT_MAX = 2048               # TODO(synk): 4096 on v5e/v6e (128 MiB VMEM); keep <=2048 on v7x.
FT = min(MLP, FT_MAX)       # FFN hidden-dim tile (k-tiling of w_fc/w_proj)
KC = MLP // FT              # number of FFN chunks per layer
L = 2                       # number of resblocks
V = 64                      # vocab size
CORES = 1                   # TODO(synk): set to 2 on v7x to split the batch across both TCs.
BC = B // CORES             # batch elements handled per core
ROWS = BC * SP              # activation rows resident per core (the matmul M dimension)
EPS = 1e-5
SCALE = 1.0 / math.sqrt(HD)
NEG = -1e30                 # finite "masked" value (safe with padded key columns)

assert MLP % FT == 0 and B % CORES == 0


def _vmem_limit_bytes():
    # Scale the scoped-VMEM limit to the chip (v7x has only 64 MiB physical VMEM).
    try:
        cap = pltpu.get_tpu_info().vmem_capacity_bytes
    except Exception:
        cap = 64 * 1024 * 1024
    return min(int(cap * 3 // 4), 96 * 1024 * 1024)


VMEM_LIMIT = _vmem_limit_bytes()


def _erf(x):
    # Abramowitz & Stegun 7.1.26 polynomial, |err| < 1.5e-7.
    # TODO(synk): used instead of lax.erf because Mosaic has no native erf lowering.
    ax = jnp.abs(x)
    t = pl.reciprocal(1.0 + 0.3275911 * ax, approx=True)   # divide on the EUP slot
    poly = ((((1.061405429 * t - 1.453152027) * t + 1.421413741) * t
             - 0.284496736) * t + 0.254829592) * t
    y = 1.0 - poly * jnp.exp(-ax * ax)
    return jnp.where(x < 0, -y, y)


def _gelu_exact(x):
    # nn.GELU() (exact, erf-based) as used by open_clip ViT-H-14.  Kept in f32.
    return 0.5 * x * (1.0 + _erf(x * (1.0 / math.sqrt(2.0))))


def _layer_norm(v, w, b):
    mu = jnp.mean(v, axis=-1, keepdims=True)
    c = v - mu
    var = jnp.mean(c * c, axis=-1, keepdims=True)
    return c * jax.lax.rsqrt(var + EPS) * w + b


def clip_text_kernel(x_emb_ref, mask_ref,
                     ln1_w, ln1_b, w_qkv, b_qkv, wo, bo, ln2_w, ln2_b,
                     w_fc, b_fc, w_proj, b_proj, lnf_w, lnf_b,
                     out_ref, acc_ref, h2_ref):
    l = pl.program_id(1)
    kc = pl.program_id(2)
    nl = pl.num_programs(1)
    nk = pl.num_programs(2)
    bf16 = jnp.bfloat16

    # ---------------- phase 1 (first FFN chunk): attention half of the resblock ---------
    @pl.when(kc == 0)
    def _attention():
        @pl.when(l == 0)
        def _():
            # Seed the resident residual stream (all batch rows folded into M).
            out_ref[...] = x_emb_ref[...]

        x = out_ref[...]                                           # (ROWS, D) f32 residual
        h = _layer_norm(x, ln1_w[0], ln1_b[0])

        # Fused QKV projection: one (ROWS,D)@(D,3D) bf16 matmul, f32 accumulate.
        qkv = jnp.dot(h.astype(bf16), w_qkv[0],
                      preferred_element_type=jnp.float32) + b_qkv[0]

        qkv3 = qkv.reshape(BC, SP, 3 * D)                          # leading split: layout-free

        def split_heads(base):
            # (H*BC, SP, HD) with a head-major leading axis (one batched einsum below).
            # TODO(synk): replace the per-head lane slices with a single lane-layout-aware
            # pltpu.einshape reshape+transpose once its grouping syntax is verified.
            return jnp.concatenate(
                [qkv3[:, :, base + hh * HD: base + (hh + 1) * HD] for hh in range(H)],
                axis=0)

        qh = split_heads(0)
        kh = split_heads(D)
        vh = split_heads(2 * D)

        # SCALE applied once to q in f32 (power-of-two -> exact before the bf16 cast).
        s = jnp.einsum('nqd,nkd->nqk',
                       (qh * SCALE).astype(bf16), kh.astype(bf16),
                       preferred_element_type=jnp.float32)         # (H*BC, SP, SP)
        s = s + mask_ref[...][None]                                # causal + pad-column mask

        m = jnp.max(s, axis=-1, keepdims=True)                     # softmax in f32
        p = jnp.exp(s - m)
        # NOTE: approx reciprocal (~1e-4 rel) is within test tolerance; use exact for prod.
        p = p * pl.reciprocal(jnp.sum(p, axis=-1, keepdims=True), approx=True)

        ah = jnp.einsum('nqk,nkd->nqd', p.astype(bf16), vh.astype(bf16),
                        preferred_element_type=jnp.float32)        # (H*BC, SP, HD)
        a = jnp.concatenate([ah[hh * BC:(hh + 1) * BC] for hh in range(H)], axis=-1)
        a = a.reshape(ROWS, D)
        a = jnp.dot(a.astype(bf16), wo[0],
                    preferred_element_type=jnp.float32) + bo[0]

        x = x + a
        out_ref[...] = x                                           # stash post-attn residual
        h2_ref[...] = _layer_norm(x, ln2_w[0], ln2_b[0]).astype(bf16)
        # Fold b_proj into the accumulator init (saves one (ROWS,D) add at finalize).
        acc_ref[...] = jnp.broadcast_to(b_proj[0], acc_ref.shape)

    # ---------------- phase 2 (every FFN chunk): partial MLP over a hidden-dim tile ------
    y = jnp.dot(h2_ref[...], w_fc[0], preferred_element_type=jnp.float32) + b_fc[0]
    y = _gelu_exact(y)                                             # (ROWS, FT) f32
    acc_ref[...] += jnp.dot(y.astype(bf16), w_proj[0],
                            preferred_element_type=jnp.float32)

    # ---------------- phase 3 (last FFN chunk): close the residual, fuse ln_final --------
    @pl.when(kc == nk - 1)
    def _finalize():
        x = out_ref[...] + acc_ref[...]

        @pl.when(l < nl - 1)
        def _():
            out_ref[...] = x

        @pl.when(l == nl - 1)
        def _():
            out_ref[...] = _layer_norm(x, lnf_w[0], lnf_b[0])


@partial(jax.jit, static_argnames='layer')
def frozen_open_clip_encode(tokens, params, layer='last'):
    """Equivalent of FrozenOpenCLIPEmbedder.encode_with_transformer on token ids."""
    layer_idx = {'last': 0, 'penultimate': 1}[layer]
    n_run = L - layer_idx

    # Glue (plain JAX): token-embedding gather + positional embedding, padded to SP rows per
    # batch element and flattened to (B*SP, D) so the batch rides the matmul M dimension.
    # TODO(synk): the open_clip BPE tokenizer (text -> token ids) has no Pallas equivalent.
    x_emb = (params['token_embedding'][tokens]
             + params['positional_embedding'][None, :, :]).astype(jnp.float32)
    x_emb = jnp.pad(x_emb, ((0, 0), (0, SP - S), (0, 0)))
    x_flat = x_emb.reshape(B * SP, D)

    # open_clip build_attention_mask: additive causal mask, extended with NEG over padded
    # key columns (finite, so fully-computed padded rows stay NaN-free).
    causal = jnp.tril(jnp.ones((SP, SP), dtype=bool))
    valid_k = (jnp.arange(SP) < S)[None, :]
    mask = jnp.where(causal & valid_k, 0.0, NEG).astype(jnp.float32)

    def per_layer(name):
        a = params[name]
        return pl.BlockSpec((1,) + a.shape[1:], lambda c, l, k: (l, 0, 0))

    in_specs = [
        pl.BlockSpec((ROWS, D), lambda c, l, k: (c, 0)),       # x_emb (seeds residual)
        pl.BlockSpec((SP, SP), lambda c, l, k: (0, 0)),        # causal + pad mask
        per_layer('ln1_w'), per_layer('ln1_b'),
        per_layer('w_qkv'), per_layer('b_qkv'),
        per_layer('wo'), per_layer('bo'),
        per_layer('ln2_w'), per_layer('ln2_b'),
        pl.BlockSpec((1, D, FT), lambda c, l, k: (l, 0, k)),   # w_fc   (hidden-dim tiled)
        pl.BlockSpec((1, 1, FT), lambda c, l, k: (l, 0, k)),   # b_fc   (hidden-dim tiled)
        pl.BlockSpec((1, FT, D), lambda c, l, k: (l, k, 0)),   # w_proj (hidden-dim tiled)
        per_layer('b_proj'),
        pl.BlockSpec((1, 1, D), lambda c, l, k: (0, 0, 0)),    # lnf_w
        pl.BlockSpec((1, 1, D), lambda c, l, k: (0, 0, 0)),    # lnf_b
    ]
    args = [x_flat, mask,
            params['ln1_w'], params['ln1_b'],
            params['w_qkv'], params['b_qkv'],
            params['wo'], params['bo'],
            params['ln2_w'], params['ln2_b'],
            params['w_fc'], params['b_fc'],
            params['w_proj'], params['b_proj'],
            params['lnf_w'], params['lnf_b']]

    out = pl.pallas_call(
        clip_text_kernel,
        out_shape=jax.ShapeDtypeStruct((B * SP, D), jnp.float32),
        grid_spec=pltpu.PrefetchScalarGridSpec(
            num_scalar_prefetch=0,
            # (core-split, layer, ffn-chunk): weights stream from HBM once per core per layer.
            grid=(CORES, n_run, KC),
            in_specs=in_specs,
            out_specs=pl.BlockSpec((ROWS, D), lambda c, l, k: (c, 0)),
            scratch_shapes=[pltpu.VMEM((ROWS, D), jnp.float32),    # MLP accumulator
                            pltpu.VMEM((ROWS, D), jnp.bfloat16)],  # ln2(x) stash (bf16)
        ),
        compiler_params=pltpu.CompilerParams(
            dimension_semantics=("parallel", "arbitrary", "arbitrary"),
            vmem_limit_bytes=VMEM_LIMIT),
    )(*args)

    # Drop the padded query rows; return (B, S, D) like the PyTorch module.
    return out.reshape(B, SP, D)[:, :S, :]


def init_params(key):
    ks = jax.random.split(key, 12)

    def nrm(k, shape, scale=0.02, dtype=jnp.float32):
        return (scale * jax.random.normal(k, shape, jnp.float32)).astype(dtype)

    bf = jnp.bfloat16   # matmul weights streamed as bf16; everything else stays f32
    return {
        'token_embedding': nrm(ks[0], (V, D)),
        'positional_embedding': nrm(ks[1], (S, D), 0.01),
        'ln1_w': jnp.ones((L, 1, D), jnp.float32),
        'ln1_b': jnp.zeros((L, 1, D), jnp.float32),
        'w_qkv': nrm(ks[2], (L, D, 3 * D), dtype=bf),    # fused in_proj, pre-transposed (in,out)
        'b_qkv': nrm(ks[3], (L, 1, 3 * D), 0.01),
        'wo': nrm(ks[4], (L, D, D), dtype=bf),
        'bo': nrm(ks[5], (L, 1, D), 0.01),
        'ln2_w': jnp.ones((L, 1, D), jnp.float32),
        'ln2_b': jnp.zeros((L, 1, D), jnp.float32),
        'w_fc': nrm(ks[6], (L, D, MLP), dtype=bf),
        'b_fc': nrm(ks[7], (L, 1, MLP), 0.01),
        'w_proj': nrm(ks[8], (L, MLP, D), dtype=bf),
        'b_proj': nrm(ks[9], (L, 1, D), 0.01),
        'lnf_w': jnp.ones((1, 1, D), jnp.float32),
        'lnf_b': jnp.zeros((1, 1, D), jnp.float32),
    }


def reference(tokens, p, layer='last'):
    """Pure-JAX f32 reference of encode_with_transformer (same math as the PyTorch module;
    uses the same bf16-valued weights, upcast to f32)."""
    layer_idx = {'last': 0, 'penultimate': 1}[layer]
    f32 = lambda a: a.astype(jnp.float32)
    x = p['token_embedding'][tokens] + p['positional_embedding'][None]
    mask = jnp.where(jnp.tril(jnp.ones((S, S), bool)), 0.0, -jnp.inf)

    def ln(v, w, b):
        mu = v.mean(-1, keepdims=True)
        var = ((v - mu) ** 2).mean(-1, keepdims=True)
        return (v - mu) / jnp.sqrt(var + EPS) * w + b

    for l in range(L - layer_idx):
        h = ln(x, p['ln1_w'][l, 0], p['ln1_b'][l, 0])
        qkv = h @ f32(p['w_qkv'][l]) + p['b_qkv'][l, 0]
        q, k, v = qkv[..., :D], qkv[..., D:2 * D], qkv[..., 2 * D:]
        qh = q.reshape(B, S, H, HD).transpose(0, 2, 1, 3)
        kh = k.reshape(B, S, H, HD).transpose(0, 2, 1, 3)
        vh = v.reshape(B, S, H, HD).transpose(0, 2, 1, 3)
        s = jnp.einsum('bhqd,bhkd->bhqk', qh, kh) * SCALE + mask
        a = jnp.einsum('bhqk,bhkd->bhqd', jax.nn.softmax(s, axis=-1), vh)
        a = a.transpose(0, 2, 1, 3).reshape(B, S, D)
        x = x + a @ f32(p['wo'][l]) + p['bo'][l, 0]
        h2 = ln(x, p['ln2_w'][l, 0], p['ln2_b'][l, 0])
        y = jax.nn.gelu(h2 @ f32(p['w_fc'][l]) + p['b_fc'][l, 0], approximate=False)
        x = x + y @ f32(p['w_proj'][l]) + p['b_proj'][l, 0]
    return ln(x, p['lnf_w'][0, 0], p['lnf_b'][0, 0])


if __name__ == "__main__":
    key = jax.random.PRNGKey(0)
    kp, kt = jax.random.split(key)
    params = init_params(kp)
    # Synthetic stand-in for open_clip.tokenize(text): int token ids of shape (B, S).
    tokens = jax.random.randint(kt, (B, S), 0, V)

    out = frozen_open_clip_encode(tokens, params, layer='last')
    out = jax.block_until_ready(out)

    ref = reference(tokens, params, layer='last')
    assert out.shape == (B, S, D) and out.dtype == jnp.float32
    np.testing.assert_allclose(np.asarray(out), np.asarray(ref), rtol=2e-2, atol=2e-2)
    print("KERNEL_OK")
</pallas_src>

<mosaic_0001>
module attributes {stable_mosaic.version = 11 : i64} {
  func.func @clip_text_kernel(%arg0: i32, %arg1: i32, %arg2: i32, %arg3: memref<16x64xf32, #tpu.memory_space<vmem>>, %arg4: memref<8x8xf32, #tpu.memory_space<vmem>>, %arg5: memref<1x1x64xf32, #tpu.memory_space<vmem>>, %arg6: memref<1x1x64xf32, #tpu.memory_space<vmem>>, %arg7: memref<1x64x192xbf16, #tpu.memory_space<vmem>>, %arg8: memref<1x1x192xf32, #tpu.memory_space<vmem>>, %arg9: memref<1x64x64xbf16, #tpu.memory_space<vmem>>, %arg10: memref<1x1x64xf32, #tpu.memory_space<vmem>>, %arg11: memref<1x1x64xf32, #tpu.memory_space<vmem>>, %arg12: memref<1x1x64xf32, #tpu.memory_space<vmem>>, %arg13: memref<1x64x256xbf16, #tpu.memory_space<vmem>>, %arg14: memref<1x1x256xf32, #tpu.memory_space<vmem>>, %arg15: memref<1x256x64xbf16, #tpu.memory_space<vmem>>, %arg16: memref<1x1x64xf32, #tpu.memory_space<vmem>>, %arg17: memref<1x1x64xf32, #tpu.memory_space<vmem>>, %arg18: memref<1x1x64xf32, #tpu.memory_space<vmem>>, %arg19: memref<16x64xf32, #tpu.memory_space<vmem>>, %arg20: memref<16x64xf32, #tpu.memory_space<vmem>>, %arg21: memref<16x64xbf16, #tpu.memory_space<vmem>>) attributes {dimension_semantics = [#tpu.dimension_semantics<parallel>, #tpu.dimension_semantics<arbitrary>, #tpu.dimension_semantics<arbitrary>], iteration_bounds = array<i64: 1, 2, 1>, scalar_prefetch = 0 : i64, scratch_operands = 2 : i64, tpu.core_type = #tpu.core_type<tc>, window_params = [{transform_indices = @transform_0, window_bounds = array<i64: 16, 64>}, {pipeline_mode = #tpu.pipeline_mode<synchronous>, transform_indices = @transform_1, window_bounds = array<i64: 8, 8>}, {transform_indices = @transform_2, window_bounds = array<i64: 1, 1, 64>}, {transform_indices = @transform_3, window_bounds = array<i64: 1, 1, 64>}, {transform_indices = @transform_4, window_bounds = array<i64: 1, 64, 192>}, {transform_indices = @transform_5, window_bounds = array<i64: 1, 1, 192>}, {transform_indices = @transform_6, window_bounds = array<i64: 1, 64, 64>}, {transform_indices = @transform_7, window_bounds = array<i64: 1, 1, 64>}, {transform_indices = @transform_8, window_bounds = array<i64: 1, 1, 64>}, {transform_indices = @transform_9, window_bounds = array<i64: 1, 1, 64>}, {transform_indices = @transform_10, window_bounds = array<i64: 1, 64, 256>}, {transform_indices = @transform_11, window_bounds = array<i64: 1, 1, 256>}, {transform_indices = @transform_12, window_bounds = array<i64: 1, 256, 64>}, {transform_indices = @transform_13, window_bounds = array<i64: 1, 1, 64>}, {pipeline_mode = #tpu.pipeline_mode<synchronous>, transform_indices = @transform_14, window_bounds = array<i64: 1, 1, 64>}, {pipeline_mode = #tpu.pipeline_mode<synchronous>, transform_indices = @transform_15, window_bounds = array<i64: 1, 1, 64>}, {transform_indices = @transform_16, window_bounds = array<i64: 16, 64>}]} {
    %c0_i32 = arith.constant 0 : i32
    %0 = arith.cmpi eq, %arg2, %c0_i32 : i32
    %1 = arith.extui %0 : i1 to i32
    %c0_i32_0 = arith.constant 0 : i32
    %2 = arith.cmpi ne, %1, %c0_i32_0 : i32
    scf.if %2 {
      %c0_i32_32 = arith.constant 0 : i32
      %60 = arith.cmpi eq, %arg1, %c0_i32_32 : i32
      %61 = arith.extui %60 : i1 to i32
      %c0_i32_33 = arith.constant 0 : i32
      %62 = arith.cmpi ne, %61, %c0_i32_33 : i32
      scf.if %62 {
        %c0_88 = arith.constant 0 : index
        %c0_89 = arith.constant 0 : index
        %181 = vector.load %arg3[%c0_88, %c0_89] : memref<16x64xf32, #tpu.memory_space<vmem>>, vector<16x64xf32>
        %c0_90 = arith.constant 0 : index
        %c0_91 = arith.constant 0 : index
        %182 = vector.load %arg19[%c0_90, %c0_91] : memref<16x64xf32, #tpu.memory_space<vmem>>, vector<16x64xf32>
        tpu.vector_store %arg19[%c0_90, %c0_91], %181 {strides = array<i32>} : memref<16x64xf32, #tpu.memory_space<vmem>>, vector<16x64xf32>,
      } else {
      }
      %c0_34 = arith.constant 0 : index
      %c0_35 = arith.constant 0 : index
      %63 = vector.load %arg19[%c0_34, %c0_35] : memref<16x64xf32, #tpu.memory_space<vmem>>, vector<16x64xf32>
      %c0_36 = arith.constant 0 : index
      %c0_37 = arith.constant 0 : index
      %c0_38 = arith.constant 0 : index
      %64 = vector.load %arg5[%c0_36, %c0_37, %c0_38] : memref<1x1x64xf32, #tpu.memory_space<vmem>>, vector<1x1x64xf32>
      %65 = vector.shape_cast %64 : vector<1x1x64xf32> to vector<1x64xf32>
      %c0_39 = arith.constant 0 : index
      %c0_40 = arith.constant 0 : index
      %c0_41 = arith.constant 0 : index
      %66 = vector.load %arg6[%c0_39, %c0_40, %c0_41] : memref<1x1x64xf32, #tpu.memory_space<vmem>>, vector<1x1x64xf32>
      %67 = vector.shape_cast %66 : vector<1x1x64xf32> to vector<1x64xf32>
      %cst_42 = arith.constant dense<0.000000e+00> : vector<16xf32>
      %68 = vector.multi_reduction <add>, %63, %cst_42 [1] : vector<16x64xf32> to vector<16xf32>
      %69 = vector.shape_cast %68 : vector<16xf32> to vector<16x1xf32>
      %cst_43 = arith.constant 6.400000e+01 : f32
      %70 = vector.broadcast %cst_43 : f32 to vector<16x1xf32>
      %71 = arith.divf %69, %70 : vector<16x1xf32>
      %72 = vector.broadcast %71 : vector<16x1xf32> to vector<16x64xf32>
      %73 = arith.subf %63, %72 : vector<16x64xf32>
      %74 = arith.mulf %73, %73 : vector<16x64xf32>
      %cst_44 = arith.constant dense<0.000000e+00> : vector<16xf32>
      %75 = vector.multi_reduction <add>, %74, %cst_44 [1] : vector<16x64xf32> to vector<16xf32>
      %76 = vector.shape_cast %75 : vector<16xf32> to vector<16x1xf32>
      %cst_45 = arith.constant 6.400000e+01 : f32
      %77 = vector.broadcast %cst_45 : f32 to vector<16x1xf32>
      %78 = arith.divf %76, %77 : vector<16x1xf32>
      %cst_46 = arith.constant 9.99999974E-6 : f32
      %79 = vector.broadcast %cst_46 : f32 to vector<16x1xf32>
      %80 = arith.addf %78, %79 : vector<16x1xf32>
      %81 = math.rsqrt %80 : vector<16x1xf32>
      %82 = vector.broadcast %81 : vector<16x1xf32> to vector<16x64xf32>
      %83 = arith.mulf %73, %82 : vector<16x64xf32>
      %84 = vector.broadcast %65 : vector<1x64xf32> to vector<16x64xf32>
      %85 = arith.mulf %83, %84 : vector<16x64xf32>
      %86 = vector.broadcast %67 : vector<1x64xf32> to vector<16x64xf32>
      %87 = arith.addf %85, %86 : vector<16x64xf32>
      %88 = arith.truncf %87 : vector<16x64xf32> to vector<16x64xbf16>
      %c0_47 = arith.constant 0 : index
      %c0_48 = arith.constant 0 : index
      %c0_49 = arith.constant 0 : index
      %89 = vector.load %arg7[%c0_47, %c0_48, %c0_49] : memref<1x64x192xbf16, #tpu.memory_space<vmem>>, vector<1x64x192xbf16>
      %90 = vector.shape_cast %89 : vector<1x64x192xbf16> to vector<64x192xbf16>
      %cst_50 = arith.constant dense<0.000000e+00> : vector<16x192xf32>
      %91 = tpu.matmul %88, %90, %cst_50 {dimension_numbers = #tpu.dot_dimension_numbers<[1], [0], [0], [1], [0, 0, 1, 1], [], []>} : vector<16x64xbf16>, vector<64x192xbf16>, vector<16x192xf32> -> vector<16x192xf32>
      %c0_51 = arith.constant 0 : index
      %c0_52 = arith.constant 0 : index
      %c0_53 = arith.constant 0 : index
      %92 = vector.load %arg8[%c0_51, %c0_52, %c0_53] : memref<1x1x192xf32, #tpu.memory_space<vmem>>, vector<1x1x192xf32>
      %93 = vector.shape_cast %92 : vector<1x1x192xf32> to vector<1x192xf32>
      %94 = vector.broadcast %93 : vector<1x192xf32> to vector<16x192xf32>
      %95 = arith.addf %91, %94 : vector<16x192xf32>
      %96 = vector.shape_cast %95 : vector<16x192xf32> to vector<2x8x192xf32>
      %97 = vector.extract_strided_slice %96 {offsets = [0, 0, 0], sizes = [2, 8, 16], strides = [1, 1, 1]} : vector<2x8x192xf32> to vector<2x8x16xf32>
      %98 = vector.extract_strided_slice %96 {offsets = [0, 0, 16], sizes = [2, 8, 16], strides = [1, 1, 1]} : vector<2x8x192xf32> to vector<2x8x16xf32>
      %99 = vector.extract_strided_slice %96 {offsets = [0, 0, 32], sizes = [2, 8, 16], strides = [1, 1, 1]} : vector<2x8x192xf32> to vector<2x8x16xf32>
      %100 = vector.extract_strided_slice %96 {offsets = [0, 0, 48], sizes = [2, 8, 16], strides = [1, 1, 1]} : vector<2x8x192xf32> to vector<2x8x16xf32>
      %101 = tpu.concatenate %97, %98, %99, %100 in 0 : vector<2x8x16xf32>, vector<2x8x16xf32>, vector<2x8x16xf32>, vector<2x8x16xf32> -> vector<8x8x16xf32>
      %102 = vector.extract_strided_slice %96 {offsets = [0, 0, 64], sizes = [2, 8, 16], strides = [1, 1, 1]} : vector<2x8x192xf32> to vector<2x8x16xf32>
      %103 = vector.extract_strided_slice %96 {offsets = [0, 0, 80], sizes = [2, 8, 16], strides = [1, 1, 1]} : vector<2x8x192xf32> to vector<2x8x16xf32>
      %104 = vector.extract_strided_slice %96 {offsets = [0, 0, 96], sizes = [2, 8, 16], strides = [1, 1, 1]} : vector<2x8x192xf32> to vector<2x8x16xf32>
      %105 = vector.extract_strided_slice %96 {offsets = [0, 0, 112], sizes = [2, 8, 16], strides = [1, 1, 1]} : vector<2x8x192xf32> to vector<2x8x16xf32>
      %106 = tpu.concatenate %102, %103, %104, %105 in 0 : vector<2x8x16xf32>, vector<2x8x16xf32>, vector<2x8x16xf32>, vector<2x8x16xf32> -> vector<8x8x16xf32>
      %107 = vector.extract_strided_slice %96 {offsets = [0, 0, 128], sizes = [2, 8, 16], strides = [1, 1, 1]} : vector<2x8x192xf32> to vector<2x8x16xf32>
      %108 = vector.extract_strided_slice %96 {offsets = [0, 0, 144], sizes = [2, 8, 16], strides = [1, 1, 1]} : vector<2x8x192xf32> to vector<2x8x16xf32>
      %109 = vector.extract_strided_slice %96 {offsets = [0, 0, 160], sizes = [2, 8, 16], strides = [1, 1, 1]} : vector<2x8x192xf32> to vector<2x8x16xf32>
      %110 = vector.extract_strided_slice %96 {offsets = [0, 0, 176], sizes = [2, 8, 16], strides = [1, 1, 1]} : vector<2x8x192xf32> to vector<2x8x16xf32>
      %111 = tpu.concatenate %107, %108, %109, %110 in 0 : vector<2x8x16xf32>, vector<2x8x16xf32>, vector<2x8x16xf32>, vector<2x8x16xf32> -> vector<8x8x16xf32>
      %cst_54 = arith.constant 2.500000e-01 : f32
      %112 = vector.broadcast %cst_54 : f32 to vector<8x8x16xf32>
      %113 = arith.mulf %101, %112 : vector<8x8x16xf32>
      %114 = arith.truncf %113 : vector<8x8x16xf32> to vector<8x8x16xbf16>
      %115 = arith.truncf %106 : vector<8x8x16xf32> to vector<8x8x16xbf16>
      "tpu.trace_start"() <{level = 10 : i32, message = "nqd,nkd->nqk"}> : () -> ()
      %cst_55 = arith.constant dense<0.000000e+00> : vector<8x8x8xf32>
      %116 = tpu.matmul %114, %115, %cst_55 {dimension_numbers = #tpu.dot_dimension_numbers<[2], [2], [1], [1], [0, 0, 0, 1, 1, 1], [0], [0]>} : vector<8x8x16xbf16>, vector<8x8x16xbf16>, vector<8x8x8xf32> -> vector<8x8x8xf32>
      "tpu.trace_stop"() : () -> ()
      %c0_56 = arith.constant 0 : index
      %c0_57 = arith.constant 0 : index
      %117 = vector.load %arg4[%c0_56, %c0_57] : memref<8x8xf32, #tpu.memory_space<vmem>>, vector<8x8xf32>
      %118 = vector.shape_cast %117 : vector<8x8xf32> to vector<1x8x8xf32>
      %119 = vector.broadcast %118 : vector<1x8x8xf32> to vector<8x8x8xf32>
      %120 = arith.addf %116, %119 : vector<8x8x8xf32>
      %cst_58 = arith.constant dense<0xFF800000> : vector<8x8xf32>
      %121 = vector.multi_reduction <maximumf>, %120, %cst_58 [2] : vector<8x8x8xf32> to vector<8x8xf32>
      %122 = vector.shape_cast %121 : vector<8x8xf32> to vector<8x8x1xf32>
      %123 = vector.broadcast %122 : vector<8x8x1xf32> to vector<8x8x8xf32>
      %124 = arith.subf %120, %123 : vector<8x8x8xf32>
      %125 = math.exp %124 : vector<8x8x8xf32>
      %cst_59 = arith.constant dense<0.000000e+00> : vector<8x8xf32>
      %126 = vector.multi_reduction <add>, %125, %cst_59 [2] : vector<8x8x8xf32> to vector<8x8xf32>
      %127 = vector.shape_cast %126 : vector<8x8xf32> to vector<8x8x1xf32>
      %128 = tpu.reciprocal %127 {approx = true} : vector<8x8x1xf32> -> vector<8x8x1xf32>
      %129 = vector.broadcast %128 : vector<8x8x1xf32> to vector<8x8x8xf32>
      %130 = arith.mulf %125, %129 : vector<8x8x8xf32>
      %131 = arith.truncf %130 : vector<8x8x8xf32> to vector<8x8x8xbf16>
      %132 = arith.truncf %111 : vector<8x8x16xf32> to vector<8x8x16xbf16>
      "tpu.trace_start"() <{level = 10 : i32, message = "nqk,nkd->nqd"}> : () -> ()
      %cst_60 = arith.constant dense<0.000000e+00> : vector<8x8x16xf32>
      %133 = tpu.matmul %131, %132, %cst_60 {dimension_numbers = #tpu.dot_dimension_numbers<[2], [1], [1], [2], [0, 0, 0, 1, 1, 2], [0], [0]>} : vector<8x8x8xbf16>, vector<8x8x16xbf16>, vector<8x8x16xf32> -> vector<8x8x16xf32>
      "tpu.trace_stop"() : () -> ()
      %134 = vector.extract_strided_slice %133 {offsets = [0, 0, 0], sizes = [2, 8, 16], strides = [1, 1, 1]} : vector<8x8x16xf32> to vector<2x8x16xf32>
      %135 = vector.extract_strided_slice %133 {offsets = [2, 0, 0], sizes = [2, 8, 16], strides = [1, 1, 1]} : vector<8x8x16xf32> to vector<2x8x16xf32>
      %136 = vector.extract_strided_slice %133 {offsets = [4, 0, 0], sizes = [2, 8, 16], strides = [1, 1, 1]} : vector<8x8x16xf32> to vector<2x8x16xf32>
      %137 = vector.extract_strided_slice %133 {offsets = [6, 0, 0], sizes = [2, 8, 16], strides = [1, 1, 1]} : vector<8x8x16xf32> to vector<2x8x16xf32>
      %138 = tpu.concatenate %134, %135, %136, %137 in 2 : vector<2x8x16xf32>, vector<2x8x16xf32>, vector<2x8x16xf32>, vector<2x8x16xf32> -> vector<2x8x64xf32>
      %139 = vector.shape_cast %138 : vector<2x8x64xf32> to vector<16x64xf32>
      %140 = arith.truncf %139 : vector<16x64xf32> to vector<16x64xbf16>
      %c0_61 = arith.constant 0 : index
      %c0_62 = arith.constant 0 : index
      %c0_63 = arith.constant 0 : index
      %141 = vector.load %arg9[%c0_61, %c0_62, %c0_63] : memref<1x64x64xbf16, #tpu.memory_space<vmem>>, vector<1x64x64xbf16>
      %142 = vector.shape_cast %141 : vector<1x64x64xbf16> to vector<64x64xbf16>
      %cst_64 = arith.constant dense<0.000000e+00> : vector<16x64xf32>
      %143 = tpu.matmul %140, %142, %cst_64 {dimension_numbers = #tpu.dot_dimension_numbers<[1], [0], [0], [1], [0, 0, 1, 1], [], []>} : vector<16x64xbf16>, vector<64x64xbf16>, vector<16x64xf32> -> vector<16x64xf32>
      %c0_65 = arith.constant 0 : index
      %c0_66 = arith.constant 0 : index
      %c0_67 = arith.constant 0 : index
      %144 = vector.load %arg10[%c0_65, %c0_66, %c0_67] : memref<1x1x64xf32, #tpu.memory_space<vmem>>, vector<1x1x64xf32>
      %145 = vector.shape_cast %144 : vector<1x1x64xf32> to vector<1x64xf32>
      %146 = vector.broadcast %145 : vector<1x64xf32> to vector<16x64xf32>
      %147 = arith.addf %143, %146 : vector<16x64xf32>
      %148 = arith.addf %63, %147 : vector<16x64xf32>
      %c0_68 = arith.constant 0 : index
      %c0_69 = arith.constant 0 : index
      %149 = vector.load %arg19[%c0_68, %c0_69] : memref<16x64xf32, #tpu.memory_space<vmem>>, vector<16x64xf32>
      tpu.vector_store %arg19[%c0_68, %c0_69], %148 {strides = array<i32>} : memref<16x64xf32, #tpu.memory_space<vmem>>, vector<16x64xf32>,
      %c0_70 = arith.constant 0 : index
      %c0_71 = arith.constant 0 : index
      %c0_72 = arith.constant 0 : index
      %150 = vector.load %arg11[%c0_70, %c0_71, %c0_72] : memref<1x1x64xf32, #tpu.memory_space<vmem>>, vector<1x1x64xf32>
      %151 = vector.shape_cast %150 : vector<1x1x64xf32> to vector<1x64xf32>
      %c0_73 = arith.constant 0 : index
      %c0_74 = arith.constant 0 : index
      %c0_75 = arith.constant 0 : index
      %152 = vector.load %arg12[%c0_73, %c0_74, %c0_75] : memref<1x1x64xf32, #tpu.memory_space<vmem>>, vector<1x1x64xf32>
      %153 = vector.shape_cast %152 : vector<1x1x64xf32> to vector<1x64xf32>
      %cst_76 = arith.constant dense<0.000000e+00> : vector<16xf32>
      %154 = vector.multi_reduction <add>, %148, %cst_76 [1] : vector<16x64xf32> to vector<16xf32>
      %155 = vector.shape_cast %154 : vector<16xf32> to vector<16x1xf32>
      %cst_77 = arith.constant 6.400000e+01 : f32
      %156 = vector.broadcast %cst_77 : f32 to vector<16x1xf32>
      %157 = arith.divf %155, %156 : vector<16x1xf32>
      %158 = vector.broadcast %157 : vector<16x1xf32> to vector<16x64xf32>
      %159 = arith.subf %148, %158 : vector<16x64xf32>
      %160 = arith.mulf %159, %159 : vector<16x64xf32>
      %cst_78 = arith.constant dense<0.000000e+00> : vector<16xf32>
      %161 = vector.multi_reduction <add>, %160, %cst_78 [1] : vector<16x64xf32> to vector<16xf32>
      %162 = vector.shape_cast %161 : vector<16xf32> to vector<16x1xf32>
      %cst_79 = arith.constant 6.400000e+01 : f32
      %163 = vector.broadcast %cst_79 : f32 to vector<16x1xf32>
      %164 = arith.divf %162, %163 : vector<16x1xf32>
      %cst_80 = arith.constant 9.99999974E-6 : f32
      %165 = vector.broadcast %cst_80 : f32 to vector<16x1xf32>
      %166 = arith.addf %164, %165 : vector<16x1xf32>
      %167 = math.rsqrt %166 : vector<16x1xf32>
      %168 = vector.broadcast %167 : vector<16x1xf32> to vector<16x64xf32>
      %169 = arith.mulf %159, %168 : vector<16x64xf32>
      %170 = vector.broadcast %151 : vector<1x64xf32> to vector<16x64xf32>
      %171 = arith.mulf %169, %170 : vector<16x64xf32>
      %172 = vector.broadcast %153 : vector<1x64xf32> to vector<16x64xf32>
      %173 = arith.addf %171, %172 : vector<16x64xf32>
      %174 = arith.truncf %173 : vector<16x64xf32> to vector<16x64xbf16>
      %c0_81 = arith.constant 0 : index
      %c0_82 = arith.constant 0 : index
      %175 = vector.load %arg21[%c0_81, %c0_82] : memref<16x64xbf16, #tpu.memory_space<vmem>>, vector<16x64xbf16>
      tpu.vector_store %arg21[%c0_81, %c0_82], %174 {strides = array<i32>} : memref<16x64xbf16, #tpu.memory_space<vmem>>, vector<16x64xbf16>,
      %c0_83 = arith.constant 0 : index
      %c0_84 = arith.constant 0 : index
      %c0_85 = arith.constant 0 : index
      %176 = vector.load %arg16[%c0_83, %c0_84, %c0_85] : memref<1x1x64xf32, #tpu.memory_space<vmem>>, vector<1x1x64xf32>
      %177 = vector.shape_cast %176 : vector<1x1x64xf32> to vector<1x64xf32>
      %178 = vector.shape_cast %177 : vector<1x64xf32> to vector<1x64xf32>
      %179 = vector.broadcast %178 : vector<1x64xf32> to vector<16x64xf32>
      %c0_86 = arith.constant 0 : index
      %c0_87 = arith.constant 0 : index
      %180 = vector.load %arg20[%c0_86, %c0_87] : memref<16x64xf32, #tpu.memory_space<vmem>>, vector<16x64xf32>
      tpu.vector_store %arg20[%c0_86, %c0_87], %179 {strides = array<i32>} : memref<16x64xf32, #tpu.memory_space<vmem>>, vector<16x64xf32>,
    } else {
    }
    %c0 = arith.constant 0 : index
    %c0_1 = arith.constant 0 : index
    %3 = vector.load %arg21[%c0, %c0_1] : memref<16x64xbf16, #tpu.memory_space<vmem>>, vector<16x64xbf16>
    %c0_2 = arith.constant 0 : index
    %c0_3 = arith.constant 0 : index
    %c0_4 = arith.constant 0 : index
    %4 = vector.load %arg13[%c0_2, %c0_3, %c0_4] : memref<1x64x256xbf16, #tpu.memory_space<vmem>>, vector<1x64x256xbf16>
    %5 = vector.shape_cast %4 : vector<1x64x256xbf16> to vector<64x256xbf16>
    %cst = arith.constant dense<0.000000e+00> : vector<16x256xf32>
    %6 = tpu.matmul %3, %5, %cst {dimension_numbers = #tpu.dot_dimension_numbers<[1], [0], [0], [1], [0, 0, 1, 1], [], []>} : vector<16x64xbf16>, vector<64x256xbf16>, vector<16x256xf32> -> vector<16x256xf32>
    %c0_5 = arith.constant 0 : index
    %c0_6 = arith.constant 0 : index
    %c0_7 = arith.constant 0 : index
    %7 = vector.load %arg14[%c0_5, %c0_6, %c0_7] : memref<1x1x256xf32, #tpu.memory_space<vmem>>, vector<1x1x256xf32>
    %8 = vector.shape_cast %7 : vector<1x1x256xf32> to vector<1x256xf32>
    %9 = vector.broadcast %8 : vector<1x256xf32> to vector<16x256xf32>
    %10 = arith.addf %6, %9 : vector<16x256xf32>
    %cst_8 = arith.constant 5.000000e-01 : f32
    %11 = vector.broadcast %cst_8 : f32 to vector<16x256xf32>
    %12 = arith.mulf %11, %10 : vector<16x256xf32>
    %cst_9 = arith.constant 0.707106769 : f32
    %13 = vector.broadcast %cst_9 : f32 to vector<16x256xf32>
    %14 = arith.mulf %10, %13 : vector<16x256xf32>
    %15 = math.absf %14 : vector<16x256xf32>
    %cst_10 = arith.constant 0.327591091 : f32
    %16 = vector.broadcast %cst_10 : f32 to vector<16x256xf32>
    %17 = arith.mulf %16, %15 : vector<16x256xf32>
    %cst_11 = arith.constant 1.000000e+00 : f32
    %18 = vector.broadcast %cst_11 : f32 to vector<16x256xf32>
    %19 = arith.addf %18, %17 : vector<16x256xf32>
    %20 = tpu.reciprocal %19 {approx = true} : vector<16x256xf32> -> vector<16x256xf32>
    %cst_12 = arith.constant 1.06140542 : f32
    %21 = vector.broadcast %cst_12 : f32 to vector<16x256xf32>
    %22 = arith.mulf %21, %20 : vector<16x256xf32>
    %cst_13 = arith.constant 1.45315206 : f32
    %23 = vector.broadcast %cst_13 : f32 to vector<16x256xf32>
    %24 = arith.subf %22, %23 : vector<16x256xf32>
    %25 = arith.mulf %24, %20 : vector<16x256xf32>
    %cst_14 = arith.constant 1.42141378 : f32
    %26 = vector.broadcast %cst_14 : f32 to vector<16x256xf32>
    %27 = arith.addf %25, %26 : vector<16x256xf32>
    %28 = arith.mulf %27, %20 : vector<16x256xf32>
    %cst_15 = arith.constant 0.284496725 : f32
    %29 = vector.broadcast %cst_15 : f32 to vector<16x256xf32>
    %30 = arith.subf %28, %29 : vector<16x256xf32>
    %31 = arith.mulf %30, %20 : vector<16x256xf32>
    %cst_16 = arith.constant 0.254829586 : f32
    %32 = vector.broadcast %cst_16 : f32 to vector<16x256xf32>
    %33 = arith.addf %31, %32 : vector<16x256xf32>
    %34 = arith.mulf %33, %20 : vector<16x256xf32>
    %cst_17 = arith.constant 0.000000e+00 : f32
    %35 = vector.broadcast %cst_17 : f32 to vector<16x256xf32>
    %36 = arith.subf %35, %15 : vector<16x256xf32>
    %37 = arith.mulf %36, %15 : vector<16x256xf32>
    %38 = math.exp %37 : vector<16x256xf32>
    %39 = arith.mulf %34, %38 : vector<16x256xf32>
    %cst_18 = arith.constant 1.000000e+00 : f32
    %40 = vector.broadcast %cst_18 : f32 to vector<16x256xf32>
    %41 = arith.subf %40, %39 : vector<16x256xf32>
    %cst_19 = arith.constant 0.000000e+00 : f32
    %42 = vector.broadcast %cst_19 : f32 to vector<16x256xf32>
    %43 = arith.cmpf olt, %14, %42 : vector<16x256xf32>
    %cst_20 = arith.constant 0.000000e+00 : f32
    %44 = vector.broadcast %cst_20 : f32 to vector<16x256xf32>
    %45 = arith.subf %44, %41 : vector<16x256xf32>
    %46 = arith.select %43, %45, %41 : vector<16x256xi1>, vector<16x256xf32>
    %cst_21 = arith.constant 1.000000e+00 : f32
    %47 = vector.broadcast %cst_21 : f32 to vector<16x256xf32>
    %48 = arith.addf %47, %46 : vector<16x256xf32>
    %49 = arith.mulf %12, %48 : vector<16x256xf32>
    %c0_22 = arith.constant 0 : index
    %c0_23 = arith.constant 0 : index
    %50 = vector.load %arg20[%c0_22, %c0_23] : memref<16x64xf32, #tpu.memory_space<vmem>>, vector<16x64xf32>
    %51 = arith.truncf %49 : vector<16x256xf32> to vector<16x256xbf16>
    %c0_24 = arith.constant 0 : index
    %c0_25 = arith.constant 0 : index
    %c0_26 = arith.constant 0 : index
    %52 = vector.load %arg15[%c0_24, %c0_25, %c0_26] : memref<1x256x64xbf16, #tpu.memory_space<vmem>>, vector<1x256x64xbf16>
    %53 = vector.shape_cast %52 : vector<1x256x64xbf16> to vector<256x64xbf16>
    %cst_27 = arith.constant dense<0.000000e+00> : vector<16x64xf32>
    %54 = tpu.matmul %51, %53, %cst_27 {dimension_numbers = #tpu.dot_dimension_numbers<[1], [0], [0], [1], [0, 0, 1, 1], [], []>} : vector<16x256xbf16>, vector<256x64xbf16>, vector<16x64xf32> -> vector<16x64xf32>
    %55 = arith.addf %50, %54 : vector<16x64xf32>
    %c0_28 = arith.constant 0 : index
    %c0_29 = arith.constant 0 : index
    %56 = vector.load %arg20[%c0_28, %c0_29] : memref<16x64xf32, #tpu.memory_space<vmem>>, vector<16x64xf32>
    tpu.vector_store %arg20[%c0_28, %c0_29], %55 {strides = array<i32>} : memref<16x64xf32, #tpu.memory_space<vmem>>, vector<16x64xf32>,
    %c0_i32_30 = arith.constant 0 : i32
    %57 = arith.cmpi eq, %arg2, %c0_i32_30 : i32
    %58 = arith.extui %57 : i1 to i32
    %c0_i32_31 = arith.constant 0 : i32
    %59 = arith.cmpi ne, %58, %c0_i32_31 : i32
    scf.if %59 {
      %c0_32 = arith.constant 0 : index
      %c0_33 = arith.constant 0 : index
      %60 = vector.load %arg19[%c0_32, %c0_33] : memref<16x64xf32, #tpu.memory_space<vmem>>, vector<16x64xf32>
      %c0_34 = arith.constant 0 : index
      %c0_35 = arith.constant 0 : index
      %61 = vector.load %arg20[%c0_34, %c0_35] : memref<16x64xf32, #tpu.memory_space<vmem>>, vector<16x64xf32>
      %62 = arith.addf %60, %61 : vector<16x64xf32>
      %c1_i32 = arith.constant 1 : i32
      %63 = arith.cmpi slt, %arg1, %c1_i32 : i32
      %64 = arith.extui %63 : i1 to i32
      %c0_i32_36 = arith.constant 0 : i32
      %65 = arith.cmpi ne, %64, %c0_i32_36 : i32
      scf.if %65 {
        %c0_39 = arith.constant 0 : index
        %c0_40 = arith.constant 0 : index
        %69 = vector.load %arg19[%c0_39, %c0_40] : memref<16x64xf32, #tpu.memory_space<vmem>>, vector<16x64xf32>
        tpu.vector_store %arg19[%c0_39, %c0_40], %62 {strides = array<i32>} : memref<16x64xf32, #tpu.memory_space<vmem>>, vector<16x64xf32>,
      } else {
      }
      %c1_i32_37 = arith.constant 1 : i32
      %66 = arith.cmpi eq, %arg1, %c1_i32_37 : i32
      %67 = arith.extui %66 : i1 to i32
      %c0_i32_38 = arith.constant 0 : i32
      %68 = arith.cmpi ne, %67, %c0_i32_38 : i32
      scf.if %68 {
        %c0_39 = arith.constant 0 : index
        %c0_40 = arith.constant 0 : index
        %c0_41 = arith.constant 0 : index
        %69 = vector.load %arg17[%c0_39, %c0_40, %c0_41] : memref<1x1x64xf32, #tpu.memory_space<vmem>>, vector<1x1x64xf32>
        %70 = vector.shape_cast %69 : vector<1x1x64xf32> to vector<1x64xf32>
        %c0_42 = arith.constant 0 : index
        %c0_43 = arith.constant 0 : index
        %c0_44 = arith.constant 0 : index
        %71 = vector.load %arg18[%c0_42, %c0_43, %c0_44] : memref<1x1x64xf32, #tpu.memory_space<vmem>>, vector<1x1x64xf32>
        %72 = vector.shape_cast %71 : vector<1x1x64xf32> to vector<1x64xf32>
        %cst_45 = arith.constant dense<0.000000e+00> : vector<16xf32>
        %73 = vector.multi_reduction <add>, %62, %cst_45 [1] : vector<16x64xf32> to vector<16xf32>
        %74 = vector.shape_cast %73 : vector<16xf32> to vector<16x1xf32>
        %cst_46 = arith.constant 6.400000e+01 : f32
        %75 = vector.broadcast %cst_46 : f32 to vector<16x1xf32>
        %76 = arith.divf %74, %75 : vector<16x1xf32>
        %77 = vector.broadcast %76 : vector<16x1xf32> to vector<16x64xf32>
        %78 = arith.subf %62, %77 : vector<16x64xf32>
        %79 = arith.mulf %78, %78 : vector<16x64xf32>
        %cst_47 = arith.constant dense<0.000000e+00> : vector<16xf32>
        %80 = vector.multi_reduction <add>, %79, %cst_47 [1] : vector<16x64xf32> to vector<16xf32>
        %81 = vector.shape_cast %80 : vector<16xf32> to vector<16x1xf32>
        %cst_48 = arith.constant 6.400000e+01 : f32
        %82 = vector.broadcast %cst_48 : f32 to vector<16x1xf32>
        %83 = arith.divf %81, %82 : vector<16x1xf32>
        %cst_49 = arith.constant 9.99999974E-6 : f32
        %84 = vector.broadcast %cst_49 : f32 to vector<16x1xf32>
        %85 = arith.addf %83, %84 : vector<16x1xf32>
        %86 = math.rsqrt %85 : vector<16x1xf32>
        %87 = vector.broadcast %86 : vector<16x1xf32> to vector<16x64xf32>
        %88 = arith.mulf %78, %87 : vector<16x64xf32>
        %89 = vector.broadcast %70 : vector<1x64xf32> to vector<16x64xf32>
        %90 = arith.mulf %88, %89 : vector<16x64xf32>
        %91 = vector.broadcast %72 : vector<1x64xf32> to vector<16x64xf32>
        %92 = arith.addf %90, %91 : vector<16x64xf32>
        %c0_50 = arith.constant 0 : index
        %c0_51 = arith.constant 0 : index
        %93 = vector.load %arg19[%c0_50, %c0_51] : memref<16x64xf32, #tpu.memory_space<vmem>>, vector<16x64xf32>
        tpu.vector_store %arg19[%c0_50, %c0_51], %92 {strides = array<i32>} : memref<16x64xf32, #tpu.memory_space<vmem>>, vector<16x64xf32>,
      } else {
      }
    } else {
    }
    return
  }
  func.func @transform_0(%arg0: i32, %arg1: i32, %arg2: i32) -> (i32, i32) {
    %c0_i32 = arith.constant 0 : i32
    %c0_i32_0 = arith.constant 0 : i32
    return %arg0, %c0_i32 : i32, i32
  }
  func.func @transform_1(%arg0: i32, %arg1: i32, %arg2: i32) -> (i32, i32) {
    %c0_i32 = arith.constant 0 : i32
    %c0_i32_0 = arith.constant 0 : i32
    %c0_i32_1 = arith.constant 0 : i32
    return %c0_i32, %c0_i32_0 : i32, i32
  }
  func.func @transform_2(%arg0: i32, %arg1: i32, %arg2: i32) -> (i32, i32, i32) {
    %c0_i32 = arith.constant 0 : i32
    %c0_i32_0 = arith.constant 0 : i32
    %c0_i32_1 = arith.constant 0 : i32
    return %arg1, %c0_i32, %c0_i32_0 : i32, i32, i32
  }
  func.func @transform_3(%arg0: i32, %arg1: i32, %arg2: i32) -> (i32, i32, i32) {
    %c0_i32 = arith.constant 0 : i32
    %c0_i32_0 = arith.constant 0 : i32
    %c0_i32_1 = arith.constant 0 : i32
    return %arg1, %c0_i32, %c0_i32_0 : i32, i32, i32
  }
  func.func @transform_4(%arg0: i32, %arg1: i32, %arg2: i32) -> (i32, i32, i32) {
    %c0_i32 = arith.constant 0 : i32
    %c0_i32_0 = arith.constant 0 : i32
    %c0_i32_1 = arith.constant 0 : i32
    return %arg1, %c0_i32, %c0_i32_0 : i32, i32, i32
  }
  func.func @transform_5(%arg0: i32, %arg1: i32, %arg2: i32) -> (i32, i32, i32) {
    %c0_i32 = arith.constant 0 : i32
    %c0_i32_0 = arith.constant 0 : i32
    %c0_i32_1 = arith.constant 0 : i32
    return %arg1, %c0_i32, %c0_i32_0 : i32, i32, i32
  }
  func.func @transform_6(%arg0: i32, %arg1: i32, %arg2: i32) -> (i32, i32, i32) {
    %c0_i32 = arith.constant 0 : i32
    %c0_i32_0 = arith.constant 0 : i32
    %c0_i32_1 = arith.constant 0 : i32
    return %arg1, %c0_i32, %c0_i32_0 : i32, i32, i32
  }
  func.func @transform_7(%arg0: i32, %arg1: i32, %arg2: i32) -> (i32, i32, i32) {
    %c0_i32 = arith.constant 0 : i32
    %c0_i32_0 = arith.constant 0 : i32
    %c0_i32_1 = arith.constant 0 : i32
    return %arg1, %c0_i32, %c0_i32_0 : i32, i32, i32
  }
  func.func @transform_8(%arg0: i32, %arg1: i32, %arg2: i32) -> (i32, i32, i32) {
    %c0_i32 = arith.constant 0 : i32
    %c0_i32_0 = arith.constant 0 : i32
    %c0_i32_1 = arith.constant 0 : i32
    return %arg1, %c0_i32, %c0_i32_0 : i32, i32, i32
  }
  func.func @transform_9(%arg0: i32, %arg1: i32, %arg2: i32) -> (i32, i32, i32) {
    %c0_i32 = arith.constant 0 : i32
    %c0_i32_0 = arith.constant 0 : i32
    %c0_i32_1 = arith.constant 0 : i32
    return %arg1, %c0_i32, %c0_i32_0 : i32, i32, i32
  }
  func.func @transform_10(%arg0: i32, %arg1: i32, %arg2: i32) -> (i32, i32, i32) {
    %c0_i32 = arith.constant 0 : i32
    %c0_i32_0 = arith.constant 0 : i32
    return %arg1, %c0_i32, %arg2 : i32, i32, i32
  }
  func.func @transform_11(%arg0: i32, %arg1: i32, %arg2: i32) -> (i32, i32, i32) {
    %c0_i32 = arith.constant 0 : i32
    %c0_i32_0 = arith.constant 0 : i32
    return %arg1, %c0_i32, %arg2 : i32, i32, i32
  }
  func.func @transform_12(%arg0: i32, %arg1: i32, %arg2: i32) -> (i32, i32, i32) {
    %c0_i32 = arith.constant 0 : i32
    %c0_i32_0 = arith.constant 0 : i32
    return %arg1, %arg2, %c0_i32 : i32, i32, i32
  }
  func.func @transform_13(%arg0: i32, %arg1: i32, %arg2: i32) -> (i32, i32, i32) {
    %c0_i32 = arith.constant 0 : i32
    %c0_i32_0 = arith.constant 0 : i32
    %c0_i32_1 = arith.constant 0 : i32
    return %arg1, %c0_i32, %c0_i32_0 : i32, i32, i32
  }
  func.func @transform_14(%arg0: i32, %arg1: i32, %arg2: i32) -> (i32, i32, i32) {
    %c0_i32 = arith.constant 0 : i32
    %c0_i32_0 = arith.constant 0 : i32
    %c0_i32_1 = arith.constant 0 : i32
    %c0_i32_2 = arith.constant 0 : i32
    return %c0_i32, %c0_i32_0, %c0_i32_1 : i32, i32, i32
  }
  func.func @transform_15(%arg0: i32, %arg1: i32, %arg2: i32) -> (i32, i32, i32) {
    %c0_i32 = arith.constant 0 : i32
    %c0_i32_0 = arith.constant 0 : i32
    %c0_i32_1 = arith.constant 0 : i32
    %c0_i32_2 = arith.constant 0 : i32
    return %c0_i32, %c0_i32_0, %c0_i32_1 : i32, i32, i32
  }
  func.func @transform_16(%arg0: i32, %arg1: i32, %arg2: i32) -> (i32, i32) {
    %c0_i32 = arith.constant 0 : i32
    %c0_i32_0 = arith.constant 0 : i32
    return %arg0, %c0_i32 : i32, i32
  }
}

</mosaic_0001>

<bundles_post_ra>
// kernel: frozen_open_clip_encode.1
= control target key start
LH: loop header
LB: loop body
LE: loop exit
PB: predicated region body
PF: predicated region fallthrough
CT: control target
= control target key end

     0   :  { %s2772_s21 = smov 0   ;;  %s2774_s22 = smov 0   ;;  %s3202_s0 = inlined_call_operand.vmem [shape: f32[16,64], index: 0, kind: input, shape index: {}]   ;;  %s3203_s1 = inlined_call_operand.vmem [shape: f32[8,8], index: 1, kind: input, shape index: {}]   ;;  %s3204_s2 = inlined_call_operand.vmem [shape: f32[2,1,64], index: 2, kind: input, shape index: {}]   ;;  %s3205_s3 = inlined_call_operand.vmem [shape: f32[2,1,64], index: 3, kind: input, shape index: {}]   ;;  %s3206_s4 = inlined_call_operand.vmem [shape: bf16[2,64,192], index: 4, kind: input, shape index: {}]   ;;  %s3207_s5 = inlined_call_operand.vmem [shape: f32[2,1,192], index: 5, kind: input, shape index: {}]   ;;  %s3208_s6 = inlined_call_operand.vmem [shape: bf16[2,64,64], index: 6, kind: input, shape index: {}]   ;;  %s3209_s7 = inlined_call_operand.vmem [shape: f32[2,1,64], index: 7, kind: input, shape index: {}]   ;;  %s3210_s8 = inlined_call_operand.vmem [shape: f32[2,1,64], index: 8, kind: input, shape index: {}]   ;;  %s3211_s9 = inlined_call_operand.vmem [shape: f32[2,1,64], index: 9, kind: input, shape index: {}]   ;;  %s3212_s10 = inlined_call_operand.vmem [shape: bf16[2,64,256], index: 10, kind: input, shape index: {}]   ;;  %s3213_s11 = inlined_call_operand.vmem [shape: f32[2,1,256], index: 11, kind: input, shape index: {}]   ;;  %s3214_s12 = inlined_call_operand.vmem [shape: bf16[2,256,64], index: 12, kind: input, shape index: {}]   ;;  %s3215_s13 = inlined_call_operand.vmem [shape: f32[2,1,64], index: 13, kind: input, shape index: {}]   ;;  %s3216_s14 = inlined_call_operand.vmem [shape: f32[1,1,64], index: 14, kind: input, shape index: {}]   ;;  %s3217_s15 = inlined_call_operand.vmem [shape: f32[1,1,64], index: 15, kind: input, shape index: {}]   ;;  %s3218_s16 = inlined_call_operand.vmem [shape: f32[16,64], index: 16, kind: output, shape index: {}]  }
   0x1   :  { %3222 = sst [smem:[#allocation7_spill]] %s3202_s0  ;;  %s2776_s23 = smov 0  }
   0x2   :  { %3223 = sst [smem:[#allocation8_spill]] %s3203_s1 }
   0x3   :  { %3224 = sst [smem:[#allocation9_spill]] %s3204_s2 }
   0x4   :  { %3225 = sst [smem:[#allocation10_spill]] %s3205_s3 }
   0x5   :  { %3226 = sst [smem:[#allocation11_spill]] %s3206_s4 }
   0x6   :  { %3227 = sst [smem:[#allocation12_spill]] %s3207_s5 }
   0x7   :  { %3228 = sst [smem:[#allocation13_spill]] %s3216_s14 }
   0x8   :  { %3229 = sst [smem:[#allocation14_spill]] %s3217_s15 }
   0x9 LB: > { %3230 = sst [smem:[#allocation4_spill]] %s2673_s22  ;;  %s41_s24 = sadd.s32 1, %s2673_s22  ;;  %s2677_s23 = sphi %s2776_s23, %s26_s23   ;;  %s2673_s22 = sphi %s2774_s22, %s3249_s22   ;;  %s2669_s21 = sphi %s2772_s21, %s3248_s21  }
   0xa   : > { %3231 = sst [smem:[#allocation5_spill]] %s2677_s23  ;;  %p2287_p0 = scmp.ge.s32.totalorder %s2677_s23, 1 }
   0xb   : > { %p43_p1 = scmp.ge.s32.totalorder %s41_s24, 2  ;;  %p609_p2 = scmp.lt.s32.totalorder %s2677_s23, 3 }
   0xd   : > { %s3251_s24 = smov (%p43_p1, %s41_s24), 0  ;;  %p610_p3 = pnand %p2287_p0, %p609_p2 }
   0xe   : > { %3232 = sst [smem:[#allocation6_spill]] %s3251_s24  ;;  %p723_p4 = scmp.lt.s32.totalorder (!%p610_p3), %s2669_s21, 1 }
   0xf   : > { %613 = sbr.rel (%p610_p3) target bundleno = 2471 (0x9a7), region = 84  ;;  %s3235_s4 = sld [smem:[#allocation11_spill]] (!%p610_p3) }
  0x10   : > { %s3236_s5 = sld [smem:[#allocation12_spill]] (!%p610_p3)  ;;  %p2298_p5 = scmp.ne.s32.totalorder (!%p610_p3), %s2669_s21, 0 }
  0x14   : > { %s2794_s25 = scalar_select %p723_p4, %s2669_s21, 1 }
  0x15   : > { %s3237_s20 = sld [smem:[#allocation7_spill]] (!%p2298_p5) }
  0x16   : > { %s2482_s17 = sshll.u32 %s2794_s25, 6  ;;  %s2290_s18 = sshll.u32 %s2794_s25, 1 }
  0x17   : > { %s2809_s26 = scalar_lea.vmem %s3235_s4, %s2482_s17  ;;  %s2814_s22 = scalar_lea.vmem %s3236_s5, %s2290_s18 }
  0x18   : > { %s2483_s23 = sshll.u32 %s2794_s25, 5  ;;  %s751_s24 = scalar_lea.vmem %s3211_s9, %s2794_s25 }
  0x19   : > { %s2824_s30 = scalar_lea.vmem %s3208_s6, %s2483_s23  ;;  %s2837_s2 = scalar_lea.vmem %s3212_s10, %s2482_s17 }
  0x1a   : > { %s2842_s28 = scalar_lea.vmem %s3213_s11, %s2290_s18  ;;  %s2485_s1 = sshll.u32 %s2794_s25, 7 }
  0x1b   : > { %s2848_s3 = scalar_lea.vmem %s3214_s12, %s2485_s1  ;;  %s783_s4 = scalar_lea.vmem %s3215_s13, %s2794_s25 }
  0x1c   : > { %798 = sbr.rel (%p2298_p5) target bundleno = 36 (0x24), region = 92 }
  0x21   : > { %v799_v0 = vld [vmem:[%s3237_s20] sm:$0xff]  ;;  %vm801_vm0 = vcmask 523264   ;;  %v800_v1 = vld [vmem:[%s3237_s20 + $0x8] sm:$0xff] }
  0x22   : > { %802 = vst.msk [vmem:[%s3218_s16] sm:$0xff] %vm801_vm0, %v799_v0 }
  0x23   : > { %803 = vst.msk [vmem:[%s3218_s16 + $0x8] sm:$0xff] %vm801_vm0, %v800_v1 }
  0x24 PF: > { %vm808_vm1 = vcmask 523264   ;;  %v2679_v6 = vmov 64.0   ;;  %v2325_v23 = vld [vmem:[%s2809_s26 + $0x30] sm:$0xf]  ;;  %v2493_v24 = vld [vmem:[%s2809_s26 + $0x34] sm:$0xf0]  ;;  %s3244_s5 = scalar_lea.vmem %s3210_s8, %s2794_s25 }
  0x25   : > { %2591 = vrcp.f32 %v2679_v6  ;;  %v2326_v25 = vor.u32 %v2493_v24, %v2325_v23  ;;  %v2317_v26 = vld [vmem:[%s2809_s26 + $0x20] sm:$0xf]  ;;  %v2491_v27 = vld [vmem:[%s2809_s26 + $0x24] sm:$0xf0]  ;;  %v2309_v29 = vld [vmem:[%s2809_s26 + $0x10] sm:$0xf] }
  0x26   : > { %v2318_v28 = vor.u32 %v2491_v27, %v2317_v26  ;;  %v2489_v30 = vld [vmem:[%s2809_s26 + $0x14] sm:$0xf0]  ;;  %v2301_v32 = vld [vmem:[%s2809_s26] sm:$0xf]  ;;  %v2487_v33 = vld [vmem:[%s2809_s26 + $0x4] sm:$0xf0] }
  0x27   : > { %932 = vmatpush.bf16.msra.mxu1 %v2326_v25  ;;  %v2310_v31 = vor.u32 %v2489_v30, %v2309_v29  ;;  %v2302_v35 = vor.u32 %v2487_v33, %v2301_v32  ;;  %v2492_v38 = vld [vmem:[%s2809_s26 + $0x34] sm:$0xf]  ;;  %v2327_v39 = vld [vmem:[%s2809_s26 + $0x38] sm:$0xf0]  ;;  %v2490_v41 = vld [vmem:[%s2809_s26 + $0x24] sm:$0xf] }
  0x28   : > { %v2330_v40 = vor.u32 %v2492_v38, %v2327_v39  ;;  %v2319_v42 = vld [vmem:[%s2809_s26 + $0x28] sm:$0xf0]  ;;  %v2488_v46 = vld [vmem:[%s2809_s26 + $0x14] sm:$0xf]  ;;  %v2311_v47 = vld [vmem:[%s2809_s26 + $0x18] sm:$0xf0] }
  0x29   : > { %v2870_v2 = vld [vmem:[%s3218_s16] sm:$0xff]  ;;  %v2322_v44 = vor.u32 %v2490_v41, %v2319_v42  ;;  %v2314_v51 = vor.u32 %v2488_v46, %v2311_v47  ;;  %v2303_v53 = vld [vmem:[%s2809_s26 + $0x8] sm:$0xf0]  ;;  %s3238_s18 = sld [smem:[#allocation9_spill]]  ;;  %s2680_s19 = smov 80   ;;  %vm1026_vm9 = vcmask 130048  }
  0x2a   : > { %v809_v3 = vsel %vm808_vm1, %v2870_v2, 0.0  ;;  %v2877_v4 = vld [vmem:[%s3218_s16 + $0x8] sm:$0xff]  ;;  %v2486_v52 = vld [vmem:[%s2809_s26 + $0x4] sm:$0xf]  ;;  %s3240_s1 = sld [smem:[#allocation10_spill]]  ;;  %s2681_s29 = smov 112  }
  0x2b   : > { %810 = vadd.xlane.f32.xlu0 %v809_v3  ;;  %v812_v5 = vsel %vm808_vm1, %v2877_v4, 0.0  ;;  %v2592_v7 = vpop.eup %2591  ;;  %933 = vmatpush.bf16.msra.mxu1 %v2318_v28  ;;  %v2306_v56 = vor.u32 %v2486_v52, %v2303_v53  ;;  %s2683_s0 = smov 96   ;;  %vm1322_vm10 = vcmask 1043456   ;;  %s3242_s17 = sld [smem:[#allocation8_spill]]  ;;  %vm1214_vm11 = vcmask 64512  }
  0x2c   : > { %v816_v8 = vmul.f32 64.0, %v2592_v7  ;;  %vm820_vm2 = vweird.f32 %v2592_v7  ;;  %s2686_s14 = smov 48   ;;  %vm1498_vm12 = vcmask 261120   ;;  %vm1501_vm13 = vcmask 392192   ;;  %p2476_p6 = scmp.ge.s32.totalorder %s2669_s21, 1 }
  0x2e   : > { %v817_v9 = vsub.f32 1.0, %v816_v8 }
  0x2f   : > { %934 = vmatpush.bf16.msra.mxu1 %v2310_v31  ;;  %s3239_s27 = scalar_lea.vmem %s3238_s18, %s2794_s25  ;;  %s2684_s18 = smov 32  }
  0x30   : > { %v818_v10 = vmul.f32 %v2592_v7, %v817_v9  ;;  %v2585_v3 = vld [vmem:[%s3239_s27] ss:$0 sm:$0xff]  ;;  %s3241_s23 = scalar_lea.vmem %s3240_s1, %s2794_s25  ;;  %s2685_s27 = smov 16  }
  0x31   : > { %v2586_v9 = vld [vmem:[%s3241_s23] ss:$0 sm:$0xff]  ;;  %s3243_s1 = scalar_lea.vmem %s3209_s7, %s2794_s25 }
  0x32   : > { %v819_v11 = vadd.f32 %v2592_v7, %v818_v10 }
  0x33   : > { %813 = vadd.xlane.f32.xlu0 %v812_v5  ;;  %935 = vmatpush.bf16.msra.mxu1 %v2302_v35 }
  0x34   : > { %v2881_v12 = vsel %vm820_vm2, %v2592_v7, %v819_v11 }
  0x37   : > { %946 = vmatpush.bf16.msrb.mxu1 %v2330_v40 }
  0x3b   : > { %947 = vmatpush.bf16.msrb.mxu1 %v2322_v44 }
  0x3f   : > { %948 = vmatpush.bf16.msrb.mxu1 %v2314_v51 }
  0x43   : > { %949 = vmatpush.bf16.msrb.mxu1 %v2306_v56 }
  0x9e   : > { %v811_v13 = vpop.xlane.xlu0 %810 }
  0x9f   : > { %v822_v14 = vmul.f32 %v2881_v12, %v811_v13 }
  0xa1   : > { %v2885_v15 = vsub.f32 %v2870_v2, %v822_v14 }
  0xa3   : > { %v826_v16 = vmul.f32 %v2885_v15, %v2885_v15 }
  0xa5   : > { %v828_v17 = vsel %vm808_vm1, %v826_v16, 0.0 }
  0xa6   : > { %829 = vadd.xlane.f32.xlu1 %v828_v17  ;;  %v814_v18 = vpop.xlane.xlu0 %813 }
  0xa7   : > { %v823_v19 = vmul.f32 %v2881_v12, %v814_v18 }
  0xa9   : > { %v2892_v20 = vsub.f32 %v2877_v4, %v823_v19 }
  0xab   : > { %v827_v21 = vmul.f32 %v2892_v20, %v2892_v20 }
  0xad   : > { %v831_v22 = vsel %vm808_vm1, %v827_v21, 0.0 }
  0xae   : > { %832 = vadd.xlane.f32.xlu1 %v831_v22 }
 0x119   : > { %v830_v34 = vpop.xlane.xlu1 %829 }
 0x11a   : > { %v834_v36 = vmul.f32 %v830_v34, %v2881_v12 }
 0x11c   : > { %v836_v37 = vadd.f32 1e-05, %v834_v36 }
 0x11e   : > { %2593 = vrsqrt.f32 %v836_v37  ;;  %vm844_vm4 = vweird.f32 %v836_v37 }
 0x121   : > { %v833_v43 = vpop.xlane.xlu1 %832 }
 0x122   : > { %v835_v45 = vmul.f32 %v833_v43, %v2881_v12 }
 0x124   : > { %v2594_v48 = vpop.eup %2593  ;;  %v837_v49 = vadd.f32 1e-05, %v835_v45 }
 0x125   : > { %v839_v50 = vmul.f32 %v2594_v48, %v836_v37  ;;  %vm845_vm3 = vweird.f32 %v2594_v48 }
 0x126   : > { %2595 = vrsqrt.f32 %v837_v49  ;;  %vm846_vm5 = vmor %vm844_vm4, %vm845_vm3  ;;  %vm854_vm7 = vweird.f32 %v837_v49  ;;  %vm1620_vm3 = vcmask 519168  }
 0x127   : > { %v840_v54 = vmul.f32 %v2594_v48, %v839_v50 }
 0x129   : > { %v841_v55 = vmul.f32 0.5, %v840_v54 }
 0x12b   : > { %v842_v57 = vsub.f32 1.5, %v841_v55 }
 0x12c   : > { %v2596_v58 = vpop.eup %2595 }
 0x12d   : > { %v843_v59 = vmul.f32 %v2594_v48, %v842_v57  ;;  %v849_v60 = vmul.f32 %v2596_v58, %v837_v49  ;;  %vm855_vm6 = vweird.f32 %v2596_v58 }
 0x12e   : > { %vm856_vm8 = vmor %vm854_vm7, %vm855_vm6 }
 0x12f   : > { %v850_v61 = vmul.f32 %v2596_v58, %v849_v60  ;;  %v847_v62 = vsel %vm846_vm5, %v2594_v48, %v843_v59 }
 0x130   : > { %v858_v1 = vmul.f32 %v847_v62, %v2885_v15  ;;  %v879_v15 = vld [vmem:[%s2814_s22] sm:$0x3]  ;;  %s2682_s22 = smov 64  }
 0x131   : > { %v851_v63 = vmul.f32 0.5, %v850_v61  ;;  %v881_v16 = vperm.slane %v879_v15, 0  ;;  %v882_v25 = vperm.slane %v879_v15, 1 }
 0x132   : > { %v863_v8 = vmul.f32 %v2585_v3, %v858_v1 }
 0x133   : > { %v852_v0 = vsub.f32 1.5, %v851_v63 }
 0x134   : > { %v868_v11 = vadd.f32 %v2586_v9, %v863_v8 }
 0x135   : > { %v853_v5 = vmul.f32 %v2596_v58, %v852_v0 }
 0x137   : > { %v857_v6 = vsel %vm856_vm8, %v2596_v58, %v853_v5 }
 0x138   : > { %v859_v7 = vmul.f32 %v857_v6, %v2892_v20 }
 0x13a   : > { %v864_v10 = vmul.f32 %v2585_v3, %v859_v7 }
 0x13c   : > { %v869_v13 = vadd.f32 %v2586_v9, %v864_v10 }
 0x13e   : > { %v870_v14 = vpack.c.bf16 %v869_v13, %v868_v11 }
 0x140   : > { %2331 = vmatmul.msk.bf16.vlgmr.msra.gmra.mxu1 %vm808_vm1, %v870_v14 }
 0x150   : > { %2332 = vmatmul.msk.bf16.vlgmr.msrb.gmra.mxu1 %vm808_vm1, %v870_v14 }
 0x1bd   : > { %v937_v17 = vpop.f32.mrf.mxu1 }
 0x1be   : > { %v938_v18 = vadd.f32 %v937_v17, %v881_v16 }
 0x1c0   : > { %970 = vrot.lane.b32.xlu0 %v938_v18, %s2680_s19  ;;  %958 = vrot.lane.b32.xlu2 %v938_v18, %s2681_s29  ;;  %v1012_v29 = vpack.c.bf16 %v938_v18, %v938_v18  ;;  %v996_v57 = vmul.f32 0.25, %v938_v18 }
 0x1c2   : > { %v1022_v31 = vunpack.c.l.b16 %v1012_v29  ;;  %v1004_v62 = vpack.c.bf16 %v996_v57, %v996_v57 }
 0x1c4   : > { %v1023_v32 = vpack.c.b16 %v1022_v31, %v1022_v31 }
 0x1c5   : > { %v939_v19 = vpop.f32.mrf.mxu1 }
 0x1c6   : > { %v940_v20 = vadd.f32 %v939_v19, %v881_v16 }
 0x1c8   : > { %972 = vrot.lane.b32.xlu1 %v940_v20, %s2680_s19  ;;  %960 = vrot.lane.b32.xlu2 %v940_v20, %s2681_s29  ;;  %v1013_v21 = vpack.c.bf16 %v940_v20, %v940_v20  ;;  %v997_v63 = vmul.f32 0.25, %v940_v20 }
 0x1ca   : > { %v1047_v22 = vunpack.c.l.b16 %v1013_v21  ;;  %v1005_v0 = vpack.c.bf16 %v997_v63, %v997_v63 }
 0x1cc   : > { %v1048_v23 = vpack.c.b16 %v1047_v22, %v1047_v22 }
 0x1cd   : > { %v951_v24 = vpop.f32.mrf.mxu1 }
 0x1ce   : > { %1049 = vrot.lane.b32.xlu0 %v1048_v23, %s2682_s22  ;;  %v2936_v27 = vadd.f32 %v951_v24, %v882_v25 }
 0x1d0   : > { %964 = vrot.lane.b32.xlu2 %v938_v18, %s2683_s0  ;;  %v1311_v13 = vpack.c.bf16 %v2936_v27, %v2936_v27 }
 0x1d2   : > { %v1324_v17 = vsel %vm1322_vm10, %v1311_v13, 0 }
 0x1d5   : > { %v953_v26 = vpop.f32.mrf.mxu1 }
 0x1d6   : > { %v2938_v28 = vadd.f32 %v953_v26, %v882_v25 }
 0x1d8   : > { %966 = vrot.lane.b32.xlu2 %v940_v20, %s2683_s0  ;;  %v2943_v30 = vpack.i.bf16 %v2938_v28, %v2936_v27  ;;  %v1312_v24 = vpack.c.bf16 %v2938_v28, %v2938_v28  ;;  %v1020_v28 = vld [vmem:[%s3242_s17] sm:$0xff] }
 0x1da   : > { %v1343_v31 = vsel %vm1322_vm10, %v1312_v24, 0 }
 0x1e0   : > { %1024 = vrot.lane.b32.xlu2 %v1023_v32, %s2682_s22 }
 0x21a   : > { %v959_v33 = vpop.permute.xlu2 %958 }
 0x21b   : > { %v1014_v34 = vpack.c.bf16 %v959_v33, %v959_v33  ;;  %v998_v5 = vmul.f32 0.25, %v959_v33 }
 0x21d   : > { %v1071_v35 = vunpack.c.l.b16 %v1014_v34  ;;  %v1006_v6 = vpack.c.bf16 %v998_v5, %v998_v5 }
 0x21f   : > { %v1072_v36 = vpack.c.b16 %v1071_v35, %v1071_v35 }
 0x221   : > { %1073 = vrot.lane.b32.xlu2 %v1072_v36, %s2682_s22 }
 0x222   : > { %v961_v37 = vpop.permute.xlu2 %960 }
 0x223   : > { %v1015_v38 = vpack.c.bf16 %v961_v37, %v961_v37  ;;  %v999_v11 = vmul.f32 0.25, %v961_v37 }
 0x225   : > { %v1095_v39 = vunpack.c.l.b16 %v1015_v38  ;;  %v1007_v14 = vpack.c.bf16 %v999_v11, %v999_v11 }
 0x227   : > { %v1096_v40 = vpack.c.b16 %v1095_v39, %v1095_v39 }
 0x229   : > { %1097 = vrot.lane.b32.xlu1 %v1096_v40, %s2682_s22 }
 0x22a   : > { %v965_v41 = vpop.permute.xlu2 %964 }
 0x22b   : > { %v1016_v42 = vpack.c.bf16 %v965_v41, %v965_v41  ;;  %v1000_v18 = vmul.f32 0.25, %v965_v41 }
 0x22d   : > { %v1119_v43 = vunpack.c.l.b16 %v1016_v42  ;;  %v1008_v19 = vpack.c.bf16 %v1000_v18, %v1000_v18 }
 0x22f   : > { %v1120_v44 = vpack.c.b16 %v1119_v43, %v1119_v43 }
 0x231   : > { %1121 = vrot.lane.b32.xlu1 %v1120_v44, %s2682_s22 }
 0x232   : > { %v971_v45 = vpop.permute.xlu0 %970  ;;  %v2949_v46 = vpop.permute.xlu2 %966 }
 0x233   : > { %v1018_v47 = vpack.c.bf16 %v971_v45, %v971_v45  ;;  %v1017_v50 = vpack.c.bf16 %v2949_v46, %v2949_v46  ;;  %v1002_v22 = vmul.f32 0.25, %v971_v45  ;;  %v1001_v32 = vmul.f32 0.25, %v2949_v46 }
 0x235   : > { %v1167_v48 = vunpack.c.l.b16 %v1018_v47  ;;  %v1143_v53 = vunpack.c.l.b16 %v1017_v50  ;;  %v1010_v25 = vpack.c.bf16 %v1002_v22, %v1002_v22  ;;  %v1009_v33 = vpack.c.bf16 %v1001_v32, %v1001_v32 }
 0x237   : > { %v1168_v49 = vpack.c.b16 %v1167_v48, %v1167_v48  ;;  %v1144_v58 = vpack.c.b16 %v1143_v53, %v1143_v53 }
 0x239   : > { %1169 = vrot.lane.b32.xlu0 %v1168_v49, %s2682_s22 }
 0x23a   : > { %v973_v51 = vpop.permute.xlu1 %972  ;;  %v1025_v52 = vpop.permute.xlu2 %1024 }
 0x23b   : > { %v1019_v54 = vpack.c.bf16 %v973_v51, %v973_v51  ;;  %v1031_v55 = vsel %vm1026_vm9, %v1025_v52, 0  ;;  %v1003_v23 = vmul.f32 0.25, %v973_v51 }
 0x23c   : > { %1040 = vmatpush.bf16.xpose.msra.mxu2 %v1031_v55 }
 0x23d   : > { %v1191_v56 = vunpack.c.l.b16 %v1019_v54  ;;  %v1011_v26 = vpack.c.bf16 %v1003_v23, %v1003_v23 }
 0x23f   : > { %v1192_v59 = vpack.c.b16 %v1191_v56, %v1191_v56 }
 0x240   : > { %v1050_v60 = vpop.permute.xlu0 %1049 }
 0x241   : > { %1145 = vrot.lane.b32.xlu0 %v1144_v58, %s2682_s22  ;;  %1193 = vrot.lane.b32.xlu2 %v1192_v59, %s2682_s22  ;;  %v1055_v61 = vsel %vm1026_vm9, %v1050_v60, 0 }
 0x242   : > { %1064 = vmatpush.bf16.xpose.msra.mxu3 %v1055_v61 }
 0x243   : > { %2333 = vmatmul.msk.bf16.vlgmr.msra.gmra.mxu2 %vm1026_vm9, %v1004_v62 }
 0x249   : > { %2334 = vmatmul.msk.bf16.vlgmr.msra.gmra.mxu3 %vm1026_vm9, %v1005_v0 }
 0x27b   : > { %v1074_v1 = vpop.permute.xlu2 %1073 }
 0x27c   : > { %v1079_v3 = vsel %vm1026_vm9, %v1074_v1, 0 }
 0x27d   : > { %1088 = vmatpush.bf16.xpose.msrb.mxu2 %v1079_v3 }
 0x284   : > { %2335 = vmatmul.msk.bf16.vlgmr.msrb.gmra.mxu2 %vm1026_vm9, %v1006_v6 }
 0x29b   : > { %v1098_v7 = vpop.permute.xlu1 %1097  ;;  %v1194_v8 = vpop.permute.xlu2 %1193 }
 0x29c   : > { %v1199_v9 = vsel %vm1026_vm9, %v1194_v8, 0  ;;  %v1103_v10 = vsel %vm1026_vm9, %v1098_v7, 0 }
 0x29d   : > { %1112 = vmatpush.bf16.xpose.msrb.mxu3 %v1103_v10 }
 0x2a3   : > { %v1122_v15 = vpop.permute.xlu1 %1121 }
 0x2a4   : > { %2336 = vmatmul.msk.bf16.vlgmr.msrb.gmra.mxu3 %vm1026_vm9, %v1007_v14  ;;  %v1127_v16 = vsel %vm1026_vm9, %v1122_v15, 0 }
 0x2a5   : > { %1208 = vmatpush.bf16.xpose.msra.mxu3 %v1199_v9  ;;  %1136 = vmatpush.bf16.xpose.msra.mxu0 %v1127_v16 }
 0x2ab   : > { %v1170_v20 = vpop.permute.xlu0 %1169 }
 0x2ac   : > { %v1175_v21 = vsel %vm1026_vm9, %v1170_v20, 0  ;;  %2337 = vmatmul.msk.bf16.vlgmr.msra.gmra.mxu0 %vm1026_vm9, %v1008_v19 }
 0x2ad   : > { %1333 = vmatpush.bf16.msrb.mxu0 %v1324_v17  ;;  %1184 = vmatpush.bf16.xpose.msra.mxu2 %v1175_v21 }
 0x2b3   : > { %v1146_v27 = vpop.permute.xlu0 %1145 }
 0x2b4   : > { %v1151_v29 = vsel %vm1026_vm9, %v1146_v27, 0  ;;  %2339 = vmatmul.msk.bf16.vlgmr.msra.gmra.mxu2 %vm1026_vm9, %v1010_v25  ;;  %2340 = vmatmul.msk.bf16.vlgmr.msra.gmra.mxu3 %vm1026_vm9, %v1011_v26 }
 0x2b5   : > { %1160 = vmatpush.bf16.xpose.msra.mxu1 %v1151_v29 }
 0x2bc   : > { %2338 = vmatmul.msk.bf16.vlgmr.msra.gmra.mxu1 %vm1026_vm9, %v1009_v33 }
 0x2bd   : > { %1352 = vmatpush.bf16.msrb.mxu1 %v1343_v31 }
 0x2c6   : > { %v1042_v34 = vpop.f32.mrf.mxu2 }
 0x2c7   : > { %v1043_v35 = vadd.f32 %v1042_v34, %v1020_v28 }
 0x2c9   : > { %v1215_v36 = vsel %vm1214_vm11, %v1043_v35, -inf }
 0x2ca   : > { %1216 = vmax.xlane.f32.xlu0 %v1215_v36 }
 0x2cc   : > { %v1066_v37 = vpop.f32.mrf.mxu3 }
 0x2cd   : > { %v1067_v43 = vadd.f32 %v1066_v37, %v1020_v28 }
 0x2ce   : > { %v1044_v38 = vpop.f32.mrf.mxu2 }
 0x2cf   : > { %v1218_v45 = vsel %vm1214_vm11, %v1067_v43, -inf }
 0x2d4   : > { %v1068_v39 = vpop.f32.mrf.mxu3 }
 0x307   : > { %v1090_v40 = vpop.f32.mrf.mxu2 }
 0x308   : > { %v1091_v41 = vadd.f32 %v1090_v40, %v1020_v28 }
 0x30a   : > { %v1221_v42 = vsel %vm1214_vm11, %v1091_v41, -inf }
 0x30b   : > { %1222 = vmax.xlane.f32.xlu2 %v1221_v42 }
 0x30f   : > { %v1092_v44 = vpop.f32.mrf.mxu2 }
 0x313   : > { %1219 = vmax.xlane.f32.xlu2 %v1218_v45 }
 0x327   : > { %v1114_v46 = vpop.f32.mrf.mxu3 }
 0x328   : > { %v1115_v61 = vadd.f32 %v1114_v46, %v1020_v28 }
 0x329   : > { %v1138_v47 = vpop.f32.mrf.mxu0 }
 0x32a   : > { %v1139_v48 = vadd.f32 %v1138_v47, %v1020_v28  ;;  %v1224_v0 = vsel %vm1214_vm11, %v1115_v61, -inf }
 0x32c   : > { %v1227_v49 = vsel %vm1214_vm11, %v1139_v48, -inf }
 0x32d   : > { %1228 = vmax.xlane.f32.xlu2 %v1227_v49 }
 0x32f   : > { %v1116_v50 = vpop.f32.mrf.mxu3 }
 0x331   : > { %v1140_v51 = vpop.f32.mrf.mxu0 }
 0x337   : > { %v1186_v52 = vpop.f32.mrf.mxu2  ;;  %v1210_v53 = vpop.f32.mrf.mxu3 }
 0x338   : > { %v1187_v5 = vadd.f32 %v1186_v52, %v1020_v28  ;;  %v1211_v16 = vadd.f32 %v1210_v53, %v1020_v28 }
 0x339   : > { %v1162_v54 = vpop.f32.mrf.mxu1 }
 0x33a   : > { %v1163_v55 = vadd.f32 %v1162_v54, %v1020_v28  ;;  %v1233_v6 = vsel %vm1214_vm11, %v1187_v5, -inf  ;;  %v1236_v17 = vsel %vm1214_vm11, %v1211_v16, -inf }
 0x33c   : > { %v1230_v56 = vsel %vm1214_vm11, %v1163_v55, -inf }
 0x33d   : > { %1231 = vmax.xlane.f32.xlu1 %v1230_v56  ;;  %v1217_v57 = vpop.xlane.xlu0 %1216 }
 0x33e   : > { %v1239_v58 = vsub.f32 %v1043_v35, %v1217_v57 }
 0x33f   : > { %v1188_v59 = vpop.f32.mrf.mxu2  ;;  %v1212_v60 = vpop.f32.mrf.mxu3 }
 0x340   : > { %v1247_v62 = vmul.f32 1.442695, %v1239_v58 }
 0x341   : > { %v1164_v63 = vpop.f32.mrf.mxu1 }
 0x342   : > { %2597 = vpow2.f32 %v1247_v62 }
 0x345   : > { %1225 = vmax.xlane.f32.xlu1 %v1224_v0 }
 0x348   : > { %v2598_v1 = vpop.eup %2597 }
 0x349   : > { %v1263_v3 = vsel %vm1214_vm11, %v2598_v1, 0.0 }
 0x34d   : > { %1264 = vadd.xlane.f32.xlu1 %v1263_v3 }
 0x355   : > { %1234 = vmax.xlane.f32.xlu1 %v1233_v6 }
 0x37e   : > { %v1223_v7 = vpop.xlane.xlu2 %1222 }
 0x37f   : > { %v1241_v13 = vsub.f32 %v1091_v41, %v1223_v7 }
 0x381   : > { %v1251_v15 = vmul.f32 1.442695, %v1241_v13 }
 0x386   : > { %v1220_v8 = vpop.xlane.xlu2 %1219 }
 0x387   : > { %v1240_v9 = vsub.f32 %v1067_v43, %v1220_v8 }
 0x389   : > { %v1249_v10 = vmul.f32 1.442695, %v1240_v9 }
 0x38b   : > { %2599 = vpow2.f32 %v1249_v10 }
 0x38c   : > { %2601 = vpow2.f32 %v1251_v15 }
 0x391   : > { %v2600_v11 = vpop.eup %2599 }
 0x392   : > { %v1266_v14 = vsel %vm1214_vm11, %v2600_v11, 0.0  ;;  %v2602_v18 = vpop.eup %2601 }
 0x393   : > { %1267 = vadd.xlane.f32.xlu0 %v1266_v14  ;;  %v1269_v21 = vsel %vm1214_vm11, %v2602_v18, 0.0 }
 0x39b   : > { %1237 = vmax.xlane.f32.xlu0 %v1236_v17 }
 0x3a0   : > { %v1229_v19 = vpop.xlane.xlu2 %1228 }
 0x3a1   : > { %v1243_v20 = vsub.f32 %v1139_v48, %v1229_v19 }
 0x3a3   : > { %v1255_v22 = vmul.f32 1.442695, %v1243_v20  ;;  %1270 = vadd.xlane.f32.xlu0 %v1269_v21 }
 0x3a5   : > { %2603 = vpow2.f32 %v1255_v22 }
 0x3ab   : > { %v2993_v23 = vpop.eup %2603 }
 0x3ac   : > { %v1275_v24 = vsel %vm1214_vm11, %v2993_v23, 0.0 }
 0x3ad   : > { %1276 = vadd.xlane.f32.xlu1 %v1275_v24 }
 0x3b0   : > { %v1232_v25 = vpop.xlane.xlu1 %1231 }
 0x3b1   : > { %v1244_v26 = vsub.f32 %v1163_v55, %v1232_v25 }
 0x3b3   : > { %v1257_v27 = vmul.f32 1.442695, %v1244_v26 }
 0x3b5   : > { %2605 = vpow2.f32 %v1257_v27 }
 0x3b8   : > { %v1226_v29 = vpop.xlane.xlu1 %1225 }
 0x3b9   : > { %v1242_v31 = vsub.f32 %v1115_v61, %v1226_v29 }
 0x3bb   : > { %v2997_v32 = vpop.eup %2605  ;;  %v1253_v33 = vmul.f32 1.442695, %v1242_v31 }
 0x3bc   : > { %v1278_v28 = vsel %vm1214_vm11, %v2997_v32, 0.0 }
 0x3bd   : > { %2607 = vpow2.f32 %v1253_v33  ;;  %1279 = vadd.xlane.f32.xlu0 %v1278_v28 }
 0x3c0   : > { %v1265_v34 = vpop.xlane.xlu1 %1264 }
 0x3c1   : > { %2609 = vrcp.f32 %v1265_v34 }
 0x3c3   : > { %v2608_v35 = vpop.eup %2607 }
 0x3c4   : > { %v1272_v36 = vsel %vm1214_vm11, %v2608_v35, 0.0 }
 0x3c5   : > { %1273 = vadd.xlane.f32.xlu2 %v1272_v36 }
 0x3c7   : > { %v2610_v37 = vpop.eup %2609 }
 0x3c8   : > { %v1295_v38 = vmul.f32 %v2610_v37, %v2598_v1  ;;  %v1235_v39 = vpop.xlane.xlu1 %1234 }
 0x3c9   : > { %v1245_v40 = vsub.f32 %v1187_v5, %v1235_v39 }
 0x3ca   : > { %v1303_v41 = vpack.c.bf16 %v1295_v38, %v1295_v38 }
 0x3cb   : > { %v1259_v42 = vmul.f32 1.442695, %v1245_v40 }
 0x3cc   : > { %2341 = vmatmul.msk.bf16.vlgmr.msrb.gmra.mxu0 %vm1214_vm11, %v1303_v41 }
 0x3cd   : > { %2611 = vpow2.f32 %v1259_v42 }
 0x3d3   : > { %v2612_v43 = vpop.eup %2611 }
 0x3d4   : > { %v1281_v44 = vsel %vm1214_vm11, %v2612_v43, 0.0 }
 0x3d5   : > { %1282 = vadd.xlane.f32.xlu1 %v1281_v44 }
 0x3dd   : > { %2556 = vrot.lane.b32.xlu2 %v2943_v30, %s2681_s29 }
 0x3ee   : > { %2561 = vrot.lane.b32.xlu1 %v2943_v30, %s2680_s19 }
 0x406   : > { %v1268_v45 = vpop.xlane.xlu0 %1267 }
 0x407   : > { %2613 = vrcp.f32 %v1268_v45 }
 0x40d   : > { %v2614_v46 = vpop.eup %2613 }
 0x40e   : > { %v1296_v47 = vmul.f32 %v2614_v46, %v2600_v11  ;;  %v1238_v48 = vpop.xlane.xlu0 %1237 }
 0x40f   : > { %v1246_v49 = vsub.f32 %v1211_v16, %v1238_v48 }
 0x410   : > { %v1304_v50 = vpack.c.bf16 %v1296_v47, %v1296_v47 }
 0x411   : > { %v1261_v51 = vmul.f32 1.442695, %v1246_v49 }
 0x412   : > { %2342 = vmatmul.msk.bf16.vlgmr.msrb.gmra.mxu1 %vm1214_vm11, %v1304_v50 }
 0x413   : > { %2615 = vpow2.f32 %v1261_v51 }
 0x416   : > { %v1271_v54 = vpop.xlane.xlu0 %1270 }
 0x417   : > { %2617 = vrcp.f32 %v1271_v54 }
 0x419   : > { %v2616_v52 = vpop.eup %2615 }
 0x41a   : > { %v1284_v53 = vsel %vm1214_vm11, %v2616_v52, 0.0 }
 0x41b   : > { %1285 = vadd.xlane.f32.xlu0 %v1284_v53 }
 0x41d   : > { %v2618_v56 = vpop.eup %2617 }
 0x41e   : > { %v1297_v61 = vmul.f32 %v2618_v56, %v2602_v18 }
 0x420   : > { %v1277_v7 = vpop.xlane.xlu1 %1276 }
 0x42f   : > { %2566 = vrot.lane.b32.xlu0 %v2943_v30, %s2683_s0  ;;  %v1305_v30 = vpack.c.bf16 %v1297_v61, %v1297_v61 }
 0x430   : > { %v1280_v21 = vpop.xlane.xlu0 %1279 }
 0x438   : > { %v1274_v55 = vpop.xlane.xlu2 %1273 }
 0x439   : > { %2619 = vrcp.f32 %v1274_v55 }
 0x43f   : > { %v2620_v57 = vpop.eup %2619 }
 0x440   : > { %v2557_v58 = vpop.permute.xlu2 %2556  ;;  %v1298_v62 = vmul.f32 %v2620_v57, %v2608_v35  ;;  %v2497_v57 = vld [vmem:[%s2824_s30 + $0x18] sm:$0xff] }
 0x441   : > { %v2559_v59 = vunpack.i.h.bf16 %v2557_v58  ;;  %v2558_v60 = vunpack.i.l.bf16 %v2557_v58  ;;  %v2496_v58 = vld [vmem:[%s2824_s30 + $0x10] sm:$0xff] }
 0x442   : > { %v1306_v5 = vpack.c.bf16 %v1298_v62, %v1298_v62 }
 0x443   : > { %v1314_v63 = vpack.c.bf16 %v2559_v59, %v2559_v59  ;;  %v1313_v0 = vpack.c.bf16 %v2558_v60, %v2558_v60  ;;  %v2495_v59 = vld [vmem:[%s2824_s30 + $0x8] sm:$0xff]  ;;  %v2494_v60 = vld [vmem:[%s2824_s30] sm:$0xff] }
 0x445   : > { %v1362_v1 = vsel %vm1322_vm10, %v1313_v0, 0  ;;  %v1381_v3 = vsel %vm1322_vm10, %v1314_v63, 0 }
 0x446   : > { %1371 = vmatpush.bf16.msrb.mxu2 %v1362_v1  ;;  %1390 = vmatpush.bf16.msrb.mxu3 %v1381_v3 }
 0x448   : > { %v1283_v9 = vpop.xlane.xlu1 %1282 }
 0x449   : > { %v3014_v6 = vpop.f32.mrf.mxu0  ;;  %2343 = vmatmul.msk.bf16.vlgmr.msrb.gmra.mxu2 %vm1214_vm11, %v1305_v30  ;;  %2344 = vmatmul.msk.bf16.vlgmr.msrb.gmra.mxu3 %vm1214_vm11, %v1306_v5  ;;  %2621 = vrcp.f32 %v1283_v9 }
 0x44f   : > { %v2622_v10 = vpop.eup %2621 }
 0x450   : > { %v1301_v15 = vmul.f32 %v2622_v10, %v2612_v43 }
 0x451   : > { %v1337_v8 = vpop.f32.mrf.mxu0 }
 0x452   : > { %v1309_v20 = vpack.c.bf16 %v1301_v15, %v1301_v15 }
 0x460   : > { %v2562_v11 = vpop.permute.xlu1 %2561 }
 0x461   : > { %v2564_v13 = vunpack.i.h.bf16 %v2562_v11  ;;  %v2563_v14 = vunpack.i.l.bf16 %v2562_v11 }
 0x463   : > { %v1318_v16 = vpack.c.bf16 %v2564_v13, %v2564_v13  ;;  %v1317_v17 = vpack.c.bf16 %v2563_v14, %v2563_v14 }
 0x465   : > { %v1438_v18 = vsel %vm1322_vm10, %v1317_v17, 0  ;;  %v1457_v19 = vsel %vm1322_vm10, %v1318_v16, 0  ;;  %v2587_v16 = vld [vmem:[%s3243_s1] ss:$0 sm:$0xff] }
 0x466   : > { %1447 = vmatpush.bf16.msra.mxu2 %v1438_v18  ;;  %1466 = vmatpush.bf16.msra.mxu3 %v1457_v19 }
 0x469   : > { %2347 = vmatmul.msk.bf16.vlgmr.msra.gmra.mxu2 %vm1214_vm11, %v1309_v20 }
 0x48e   : > { %v1286_v22 = vpop.xlane.xlu0 %1285 }
 0x48f   : > { %2623 = vrcp.f32 %v1286_v22  ;;  %v1354_v24 = vpop.f32.mrf.mxu1 }
 0x490   : > { %2625 = vrcp.f32 %v1277_v7 }
 0x491   : > { %2627 = vrcp.f32 %v1280_v21 }
 0x495   : > { %v2624_v25 = vpop.eup %2623 }
 0x496   : > { %v1302_v26 = vmul.f32 %v2624_v25, %v2616_v52  ;;  %v2626_v31 = vpop.eup %2625 }
 0x497   : > { %v1356_v27 = vpop.f32.mrf.mxu1  ;;  %v2628_v33 = vpop.eup %2627  ;;  %v1299_v36 = vmul.f32 %v2626_v31, %v2993_v23 }
 0x498   : > { %v1310_v29 = vpack.c.bf16 %v1302_v26, %v1302_v26  ;;  %v1300_v37 = vmul.f32 %v2628_v33, %v2997_v32 }
 0x499   : > { %v1307_v42 = vpack.c.bf16 %v1299_v36, %v1299_v36  ;;  %v2506_v36 = vld [vmem:[%s2837_s2 + $0x34] sm:$0xf0] }
 0x49a   : > { %2348 = vmatmul.msk.bf16.vlgmr.msra.gmra.mxu3 %vm1214_vm11, %v1310_v29  ;;  %v1308_v43 = vpack.c.bf16 %v1300_v37, %v1300_v37  ;;  %v2505_v37 = vld [vmem:[%s2837_s2 + $0x34] sm:$0xf] }
 0x4a1   : > { %v2567_v28 = vpop.permute.xlu0 %2566 }
 0x4a2   : > { %v2569_v34 = vunpack.i.h.bf16 %v2567_v28  ;;  %v2568_v35 = vunpack.i.l.bf16 %v2567_v28 }
 0x4a4   : > { %v1316_v38 = vpack.c.bf16 %v2569_v34, %v2569_v34  ;;  %v1315_v39 = vpack.c.bf16 %v2568_v35, %v2568_v35  ;;  %v2396_v35 = vld [vmem:[%s2837_s2 + $0x30] sm:$0xf] }
 0x4a6   : > { %v1400_v40 = vsel %vm1322_vm10, %v1315_v39, 0  ;;  %v1419_v41 = vsel %vm1322_vm10, %v1316_v38, 0  ;;  %v2397_v38 = vor.u32 %v2506_v36, %v2396_v35  ;;  %v2398_v39 = vld [vmem:[%s2837_s2 + $0x38] sm:$0xf0] }
 0x4a7   : > { %1409 = vmatpush.bf16.msra.mxu0 %v1400_v40  ;;  %1428 = vmatpush.bf16.msra.mxu1 %v1419_v41  ;;  %v2401_v41 = vor.u32 %v2505_v37, %v2398_v39  ;;  %v2521_v37 = vld [vmem:[%s2848_s3 + $0x70] sm:$0xff]  ;;  %v2511_v39 = vld [vmem:[%s2848_s3 + $0x20] sm:$0xff] }
 0x4a9   : > { %1712 = vmatpush.bf16.msrb.mxu2 %v2401_v41 }
 0x4aa   : > { %2345 = vmatmul.msk.bf16.vlgmr.msra.gmra.mxu0 %vm1214_vm11, %v1307_v42  ;;  %2346 = vmatmul.msk.bf16.vlgmr.msra.gmra.mxu1 %vm1214_vm11, %v1308_v43  ;;  %v2388_v43 = vld [vmem:[%s2837_s2 + $0x20] sm:$0xf] }
 0x4ab   : > { %1548 = vmatpush.bf16.msrb.mxu0 %v2497_v57  ;;  %1698 = vmatpush.bf16.msrb.mxu1 %v2397_v38  ;;  %v2499_v57 = vld [vmem:[%s2837_s2 + $0x4] sm:$0xf] }
 0x4af   : > { %1549 = vmatpush.bf16.msrb.mxu0 %v2496_v58  ;;  %v2374_v58 = vld [vmem:[%s2837_s2 + $0x8] sm:$0xf0] }
 0x4b3   : > { %1550 = vmatpush.bf16.msrb.mxu0 %v2495_v59 }
 0x4b7   : > { %1551 = vmatpush.bf16.msrb.mxu0 %v2494_v60 }
 0x4cc   : > { %v1373_v44 = vpop.f32.mrf.mxu2  ;;  %v1392_v45 = vpop.f32.mrf.mxu3 }
 0x4cd   : > { %v2575_v46 = vpack.i.bf16 %v1392_v45, %v1373_v44  ;;  %v2504_v44 = vld [vmem:[%s2837_s2 + $0x24] sm:$0xf0]  ;;  %v2503_v45 = vld [vmem:[%s2837_s2 + $0x24] sm:$0xf] }
 0x4d4   : > { %v1375_v23 = vpop.f32.mrf.mxu2  ;;  %v1394_v47 = vpop.f32.mrf.mxu3 }
 0x4d5   : > { %v2389_v23 = vor.u32 %v2504_v44, %v2388_v43  ;;  %v2390_v47 = vld [vmem:[%s2837_s2 + $0x28] sm:$0xf0] }
 0x4d6   : > { %v2520_v43 = vld [vmem:[%s2848_s3 + $0x68] sm:$0xff] }
 0x4d7   : > { %1699 = vmatpush.bf16.msrb.mxu1 %v2389_v23  ;;  %v2510_v23 = vld [vmem:[%s2848_s3 + $0x18] sm:$0xff] }
 0x4ec   : > { %v1449_v32 = vpop.f32.mrf.mxu2 }
 0x4f4   : > { %v1451_v48 = vpop.f32.mrf.mxu2 }
 0x4f5   : > { %v2380_v48 = vld [vmem:[%s2837_s2 + $0x10] sm:$0xf] }
 0x51d   : > { %v1468_v49 = vpop.f32.mrf.mxu3 }
 0x51e   : > { %v2580_v56 = vpack.i.bf16 %v1468_v49, %v1449_v32  ;;  %v2393_v32 = vor.u32 %v2503_v45, %v2390_v47  ;;  %v2502_v49 = vld [vmem:[%s2837_s2 + $0x14] sm:$0xf0] }
 0x520   : > { %1713 = vmatpush.bf16.msrb.mxu2 %v2393_v32 }
 0x525   : > { %v1470_v50 = vpop.f32.mrf.mxu3 }
 0x526   : > { %v2501_v50 = vld [vmem:[%s2837_s2 + $0x14] sm:$0xf] }
 0x527   : > { %v1411_v51 = vpop.f32.mrf.mxu0  ;;  %v1430_v52 = vpop.f32.mrf.mxu1 }
 0x528   : > { %v2570_v53 = vpack.i.bf16 %v1430_v52, %v1411_v51  ;;  %v2381_v51 = vor.u32 %v2502_v49, %v2380_v48  ;;  %v2382_v52 = vld [vmem:[%s2837_s2 + $0x18] sm:$0xf0]  ;;  %v2519_v48 = vld [vmem:[%s2848_s3 + $0x60] sm:$0xff] }
 0x52a   : > { %2571 = vrot.lane.b32.xlu2 %v2570_v53, %s2684_s18  ;;  %v2372_v53 = vld [vmem:[%s2837_s2] sm:$0xf]  ;;  %1700 = vmatpush.bf16.msrb.mxu1 %v2381_v51  ;;  %v2509_v51 = vld [vmem:[%s2848_s3 + $0x10] sm:$0xff] }
 0x52f   : > { %v1413_v54 = vpop.f32.mrf.mxu0  ;;  %v1432_v55 = vpop.f32.mrf.mxu1 }
 0x530   : > { %v2500_v54 = vld [vmem:[%s2837_s2 + $0x4] sm:$0xf0] }
 0x531   : > { %v2373_v60 = vor.u32 %v2500_v54, %v2372_v53 }
 0x532   : > { %2576 = vrot.lane.b32.xlu2 %v2575_v46, %s2685_s27 }
 0x533   : > { %1701 = vmatpush.bf16.msrb.mxu1 %v2373_v60 }
 0x53a   : > { %2581 = vrot.lane.b32.xlu2 %v2580_v56, %s2686_s14  ;;  %v2385_v56 = vor.u32 %v2501_v50, %v2382_v52 }
 0x53c   : > { %1714 = vmatpush.bf16.msrb.mxu2 %v2385_v56  ;;  %v2518_v56 = vld [vmem:[%s2848_s3 + $0x58] sm:$0xff] }
 0x584   : > { %v2572_v61 = vpop.permute.xlu2 %2571 }
 0x585   : > { %v2574_v30 = vunpack.i.h.bf16 %v2572_v61  ;;  %v2573_v5 = vunpack.i.l.bf16 %v2572_v61  ;;  %v2377_v61 = vor.u32 %v2499_v57, %v2374_v58 }
 0x587   : > { %1715 = vmatpush.bf16.msrb.mxu2 %v2377_v61  ;;  %v2508_v61 = vld [vmem:[%s2848_s3 + $0x8] sm:$0xff] }
 0x58c   : > { %v2577_v62 = vpop.permute.xlu2 %2576 }
 0x58d   : > { %v2579_v63 = vunpack.i.h.bf16 %v2577_v62  ;;  %v2578_v0 = vunpack.i.l.bf16 %v2577_v62 }
 0x58f   : > { %v1497_v1 = vsel %vm1026_vm9, %v1354_v24, %v2579_v63  ;;  %v1496_v3 = vsel %vm1026_vm9, %v3014_v6, %v2578_v0 }
 0x590   : > { %v1499_v10 = vsel %vm1498_vm12, %v1496_v3, %v2573_v5  ;;  %v1500_v11 = vsel %vm1498_vm12, %v1497_v1, %v2574_v30 }
 0x594   : > { %v2582_v7 = vpop.permute.xlu2 %2581 }
 0x595   : > { %v2584_v8 = vunpack.i.h.bf16 %v2582_v7  ;;  %v2583_v9 = vunpack.i.l.bf16 %v2582_v7 }
 0x597   : > { %v1502_v13 = vsel %vm1501_vm13, %v1499_v10, %v2583_v9  ;;  %v1503_v14 = vsel %vm1501_vm13, %v1500_v11, %v2584_v8  ;;  %v2588_v9 = vld [vmem:[%s3244_s5] ss:$0 sm:$0xff] }
 0x598   : > { %v1504_v15 = vpack.c.bf16 %v1503_v14, %v1502_v13  ;;  %v2589_v13 = vld [vmem:[%s751_s24] ss:$0 sm:$0xff] }
 0x59a   : > { %2365 = vmatmul.msk.bf16.vlgmr.msrb.gmra.mxu0 %vm808_vm1, %v1504_v15 }
 0x617   : > { %v1553_v6 = vpop.f32.mrf.mxu0 }
 0x618   : > { %v1554_v17 = vadd.f32 %v2587_v16, %v1553_v6 }
 0x61a   : > { %v1558_v18 = vadd.f32 %v1554_v17, %v2870_v2 }
 0x61c   : > { %1560 = vst.msk [vmem:[%s3218_s16] sm:$0xff] %vm808_vm1, %v1558_v18  ;;  %v1564_v19 = vsel %vm808_vm1, %v1558_v18, 0.0 }
 0x61d   : > { %1565 = vadd.xlane.f32.xlu0 %v1564_v19 }
 0x61f   : > { %v1555_v20 = vpop.f32.mrf.mxu0 }
 0x620   : > { %v1556_v21 = vadd.f32 %v2587_v16, %v1555_v20 }
 0x622   : > { %v1559_v22 = vadd.f32 %v1556_v21, %v2877_v4 }
 0x624   : > { %1561 = vst.msk [vmem:[%s3218_s16 + $0x8] sm:$0xff] %vm808_vm1, %v1559_v22  ;;  %v1567_v2 = vsel %vm808_vm1, %v1559_v22, 0.0 }
 0x625   : > { %1568 = vadd.xlane.f32.xlu1 %v1567_v2 }
 0x690   : > { %v1566_v24 = vpop.xlane.xlu0 %1565 }
 0x691   : > { %v1570_v25 = vmul.f32 %v1566_v24, %v2881_v12 }
 0x693   : > { %v3054_v26 = vsub.f32 %v1558_v18, %v1570_v25 }
 0x695   : > { %v1574_v4 = vmul.f32 %v3054_v26, %v3054_v26 }
 0x697   : > { %v1576_v27 = vsel %vm808_vm1, %v1574_v4, 0.0  ;;  %v1639_v4 = vld [vmem:[%s2842_s28] sm:$0x3] }
 0x698   : > { %v1569_v29 = vpop.xlane.xlu1 %1568  ;;  %1577 = vadd.xlane.f32.xlu2 %v1576_v27  ;;  %v1641_v27 = vperm.slane %v1639_v4, 0  ;;  %v1642_v36 = vperm.slane %v1639_v4, 1 }
 0x699   : > { %v1571_v31 = vmul.f32 %v1569_v29, %v2881_v12  ;;  %v2513_v29 = vld [vmem:[%s2848_s3 + $0x30] sm:$0xff] }
 0x69b   : > { %v3060_v33 = vsub.f32 %v1559_v22, %v1571_v31  ;;  %v2522_v31 = vld [vmem:[%s2848_s3 + $0x78] sm:$0xff] }
 0x69c   : > { %1972 = vmatpush.bf16.msra.mxu0 %v2522_v31 }
 0x69d   : > { %v1575_v28 = vmul.f32 %v3060_v33, %v3060_v33 }
 0x69f   : > { %v1579_v34 = vsel %vm808_vm1, %v1575_v28, 0.0 }
 0x6a0   : > { %1580 = vadd.xlane.f32.xlu0 %v1579_v34  ;;  %v2512_v34 = vld [vmem:[%s2848_s3 + $0x28] sm:$0xff]  ;;  %1973 = vmatpush.bf16.msra.mxu0 %v2521_v37 }
 0x6a4   : > { %1974 = vmatpush.bf16.msra.mxu0 %v2520_v43 }
 0x6a8   : > { %1975 = vmatpush.bf16.msra.mxu0 %v2519_v48 }
 0x6ac   : > { %1976 = vmatpush.bf16.msra.mxu0 %v2518_v56 }
 0x70b   : > { %v1578_v40 = vpop.xlane.xlu2 %1577 }
 0x70c   : > { %v1582_v42 = vmul.f32 %v1578_v40, %v2881_v12 }
 0x70e   : > { %v1584_v46 = vadd.f32 1e-05, %v1582_v42 }
 0x710   : > { %2629 = vrsqrt.f32 %v1584_v46  ;;  %vm1592_vm15 = vweird.f32 %v1584_v46 }
 0x713   : > { %v1581_v55 = vpop.xlane.xlu0 %1580 }
 0x714   : > { %v1583_v59 = vmul.f32 %v1581_v55, %v2881_v12 }
 0x716   : > { %v2630_v62 = vpop.eup %2629  ;;  %v1585_v63 = vadd.f32 1e-05, %v1583_v59 }
 0x717   : > { %v1587_v0 = vmul.f32 %v2630_v62, %v1584_v46  ;;  %vm1593_vm14 = vweird.f32 %v2630_v62 }
 0x718   : > { %2631 = vrsqrt.f32 %v1585_v63  ;;  %vm1594_vm0 = vmor %vm1592_vm15, %vm1593_vm14  ;;  %vm1602_vm4 = vweird.f32 %v1585_v63 }
 0x719   : > { %v1588_v1 = vmul.f32 %v2630_v62, %v1587_v0 }
 0x71b   : > { %v1589_v3 = vmul.f32 0.5, %v1588_v1  ;;  %v2517_v1 = vld [vmem:[%s2848_s3 + $0x50] sm:$0xff] }
 0x71c   : > { %1977 = vmatpush.bf16.msra.mxu0 %v2517_v1 }
 0x71d   : > { %v1590_v30 = vsub.f32 1.5, %v1589_v3 }
 0x71e   : > { %v2632_v5 = vpop.eup %2631 }
 0x71f   : > { %v1591_v7 = vmul.f32 %v2630_v62, %v1590_v30  ;;  %v1597_v8 = vmul.f32 %v2632_v5, %v1585_v63  ;;  %vm1603_vm2 = vweird.f32 %v2632_v5 }
 0x720   : > { %vm1604_vm5 = vmor %vm1602_vm4, %vm1603_vm2 }
 0x721   : > { %v1595_v10 = vsel %vm1594_vm0, %v2630_v62, %v1591_v7  ;;  %v1598_v11 = vmul.f32 %v2632_v5, %v1597_v8  ;;  %v2507_v7 = vld [vmem:[%s2848_s3] sm:$0xff] }
 0x722   : > { %v1606_v14 = vmul.f32 %v1595_v10, %v3054_v26  ;;  %v2514_v26 = vld [vmem:[%s2848_s3 + $0x38] sm:$0xff] }
 0x723   : > { %v1599_v15 = vmul.f32 0.5, %v1598_v11  ;;  %1958 = vmatpush.bf16.msrb.mxu3 %v2514_v26 }
 0x724   : > { %v1611_v16 = vmul.f32 %v2588_v9, %v1606_v14 }
 0x725   : > { %v1600_v6 = vsub.f32 1.5, %v1599_v15 }
 0x726   : > { %v1616_v17 = vadd.f32 %v2589_v13, %v1611_v16 }
 0x727   : > { %v1601_v18 = vmul.f32 %v2632_v5, %v1600_v6  ;;  %1959 = vmatpush.bf16.msrb.mxu3 %v2513_v29 }
 0x728   : > { %v1618_v19 = vpack.c.bf16 %v1616_v17, %v1616_v17 }
 0x729   : > { %v1605_v20 = vsel %vm1604_vm5, %v2632_v5, %v1601_v18 }
 0x72a   : > { %1621 = vst.msk [vmem:[#allocation3] sm:$0xf] %vm1620_vm3, %v1618_v19  ;;  %v1607_v21 = vmul.f32 %v1605_v20, %v3060_v33 }
 0x72b   : > { %1960 = vmatpush.bf16.msrb.mxu3 %v2512_v34 }
 0x72c   : > { %v1612_v22 = vmul.f32 %v2588_v9, %v1607_v21 }
 0x72e   : > { %v1617_v2 = vadd.f32 %v2589_v13, %v1612_v22  ;;  %v2516_v13 = vld [vmem:[%s2848_s3 + $0x48] sm:$0xff]  ;;  %v2515_v22 = vld [vmem:[%s2848_s3 + $0x40] sm:$0xff] }
 0x72f   : > { %1961 = vmatpush.bf16.msrb.mxu3 %v2511_v39  ;;  %1978 = vmatpush.bf16.msra.mxu0 %v2516_v13 }
 0x730   : > { %v1619_v24 = vpack.c.bf16 %v1617_v2, %v1617_v2 }
 0x732   : > { %1622 = vst.msk [vmem:[#allocation3 + $0x4] sm:$0xf] %vm1620_vm3, %v1619_v24 }
 0x733   : > { %1962 = vmatpush.bf16.msrb.mxu3 %v2510_v23  ;;  %1979 = vmatpush.bf16.msra.mxu0 %v2515_v22 }
 0x737   : > { %1963 = vmatpush.bf16.msrb.mxu3 %v2509_v51 }
 0x739   : > { %v2498_v25 = vld [vmem:[#allocation3] sm:$0xff] }
 0x73a   : > { %2402 = vmatmul.msk.bf16.vlgmr.msrb.gmra.mxu1 %vm808_vm1, %v2498_v25  ;;  %2403 = vmatmul.msk.bf16.vlgmr.msrb.gmra.mxu2 %vm808_vm1, %v2498_v25 }
 0x73b   : > { %1964 = vmatpush.bf16.msrb.mxu3 %v2508_v61 }
 0x73f   : > { %1965 = vmatpush.bf16.msrb.mxu3 %v2507_v7 }
 0x7b7   : > { %v1703_v33 = vpop.f32.mrf.mxu1 }
 0x7b8   : > { %v3101_v28 = vadd.f32 %v1703_v33, %v1641_v27 }
 0x7ba   : > { %v3105_v35 = vmul.f32 0.70710677, %v3101_v28 }
 0x7bc   : > { %v1730_v38 = vand.u32 2147483647, %v3105_v35  ;;  %vm1806_vm6 = vcmp.lt.f32.partialorder %v3105_v35, 0.0 }
 0x7bd   : > { %v1717_v40 = vpop.f32.mrf.mxu2 }
 0x7be   : > { %v1734_v41 = vmul.f32 0.3275911, %v1730_v38  ;;  %v3110_v42 = vadd.f32 %v1717_v40, %v1642_v36  ;;  %v1782_v59 = vsub.f32 0.0, %v1730_v38 }
 0x7bf   : > { %v1705_v44 = vpop.f32.mrf.mxu1 }
 0x7c0   : > { %v1738_v45 = vadd.f32 1.0, %v1734_v41  ;;  %v3114_v46 = vmul.f32 0.70710677, %v3110_v42  ;;  %v3117_v47 = vadd.f32 %v1705_v44, %v1641_v27  ;;  %v1786_v30 = vmul.f32 %v1782_v59, %v1730_v38 }
 0x7c2   : > { %2633 = vrcp.f32 %v1738_v45  ;;  %v1731_v32 = vand.u32 2147483647, %v3114_v46  ;;  %v3122_v49 = vmul.f32 0.70710677, %v3117_v47  ;;  %v1790_v16 = vmul.f32 1.442695, %v1786_v30 }
 0x7c3   : > { %vm1807_vm8 = vcmp.lt.f32.partialorder %v3114_v46, 0.0  ;;  %v1724_v22 = vmul.f32 0.5, %v3117_v47 }
 0x7c4   : > { %v1735_v50 = vmul.f32 0.3275911, %v1731_v32  ;;  %v1732_v52 = vand.u32 2147483647, %v3122_v49  ;;  %v1783_v10 = vsub.f32 0.0, %v1731_v32  ;;  %vm1808_vm7 = vcmp.lt.f32.partialorder %v3122_v49, 0.0 }
 0x7c5   : > { %v1719_v53 = vpop.f32.mrf.mxu2 }
 0x7c6   : > { %v1739_v54 = vadd.f32 1.0, %v1735_v50  ;;  %v3126_v55 = vadd.f32 %v1719_v53, %v1642_v36  ;;  %v1736_v57 = vmul.f32 0.3275911, %v1732_v52  ;;  %v1784_v19 = vsub.f32 0.0, %v1732_v52 }
 0x7c7   : > { %v1787_v20 = vmul.f32 %v1783_v10, %v1731_v32 }
 0x7c8   : > { %v2634_v58 = vpop.eup %2633  ;;  %2635 = vrcp.f32 %v1739_v54  ;;  %v3130_v60 = vmul.f32 0.70710677, %v3126_v55  ;;  %v1740_v63 = vadd.f32 1.0, %v1736_v57  ;;  %v1788_v27 = vmul.f32 %v1784_v19, %v1732_v52 }
 0x7c9   : > { %v1746_v62 = vmul.f32 1.0614054, %v2634_v58  ;;  %v1792_v31 = vmul.f32 1.442695, %v1787_v20 }
 0x7ca   : > { %v1733_v0 = vand.u32 2147483647, %v3130_v60  ;;  %2637 = vrcp.f32 %v1740_v63  ;;  %v1794_v43 = vmul.f32 1.442695, %v1788_v27  ;;  %vm1809_vm9 = vcmp.lt.f32.partialorder %v3130_v60, 0.0 }
 0x7cb   : > { %v2404_v3 = vadd.f32 -1.4531521, %v1746_v62 }
 0x7cc   : > { %v1737_v5 = vmul.f32 0.3275911, %v1733_v0  ;;  %v1785_v34 = vsub.f32 0.0, %v1733_v0 }
 0x7cd   : > { %v1754_v8 = vmul.f32 %v2634_v58, %v2404_v3 }
 0x7ce   : > { %v2636_v9 = vpop.eup %2635  ;;  %v1741_v11 = vadd.f32 1.0, %v1737_v5  ;;  %v1789_v32 = vmul.f32 %v1785_v34, %v1733_v0  ;;  %v2590_v34 = vld [vmem:[%s783_s4] ss:$0 sm:$0xff] }
 0x7cf   : > { %v1758_v14 = vadd.f32 1.4214138, %v1754_v8  ;;  %v1747_v15 = vmul.f32 1.0614054, %v2636_v9  ;;  %1627 = vst.msk [vmem:[#allocation2] sm:$0xff] %vm808_vm1, %v2590_v34 }
 0x7d0   : > { %2639 = vrcp.f32 %v1741_v11  ;;  %v2638_v6 = vpop.eup %2637  ;;  %v1796_v59 = vmul.f32 1.442695, %v1789_v32  ;;  %1628 = vst.msk [vmem:[#allocation2 + $0x8] sm:$0xff] %vm808_vm1, %v2590_v34  ;;  %v1994_v32 = vld [vmem:[%s3218_s16 + $0x8] sm:$0xff] }
 0x7d1   : > { %v1762_v17 = vmul.f32 %v2634_v58, %v1758_v14  ;;  %v2405_v18 = vadd.f32 -1.4531521, %v1747_v15  ;;  %v1748_v21 = vmul.f32 1.0614054, %v2638_v6  ;;  %2641 = vpow2.f32 %v1790_v16 }
 0x7d2   : > { %2643 = vpow2.f32 %v1792_v31 }
 0x7d3   : > { %v2408_v2 = vadd.f32 -0.28449672, %v1762_v17  ;;  %v1755_v24 = vmul.f32 %v2636_v9, %v2405_v18  ;;  %v2406_v25 = vadd.f32 -1.4531521, %v1748_v21  ;;  %2645 = vpow2.f32 %v1794_v43 }
 0x7d4   : > { %2647 = vpow2.f32 %v1796_v59 }
 0x7d5   : > { %v1770_v26 = vmul.f32 %v2634_v58, %v2408_v2  ;;  %v1759_v4 = vadd.f32 1.4214138, %v1755_v24  ;;  %v1756_v33 = vmul.f32 %v2638_v6, %v2406_v25 }
 0x7d6   : > { %v2640_v29 = vpop.eup %2639 }
 0x7d7   : > { %v1774_v36 = vadd.f32 0.2548296, %v1770_v26  ;;  %v1763_v37 = vmul.f32 %v2636_v9, %v1759_v4  ;;  %v1749_v38 = vmul.f32 1.0614054, %v2640_v29  ;;  %v1760_v39 = vadd.f32 1.4214138, %v1756_v33  ;;  %v2642_v45 = vpop.eup %2641 }
 0x7d9   : > { %v1778_v40 = vmul.f32 %v2634_v58, %v1774_v36  ;;  %v2409_v41 = vadd.f32 -0.28449672, %v1763_v37  ;;  %v2407_v44 = vadd.f32 -1.4531521, %v1749_v38  ;;  %v1764_v23 = vmul.f32 %v2638_v6, %v1760_v39  ;;  %v2644_v58 = vpop.eup %2643 }
 0x7da   : > { %v2646_v0 = vpop.eup %2645 }
 0x7db   : > { %v1798_v48 = vmul.f32 %v2642_v45, %v1778_v40  ;;  %v1771_v50 = vmul.f32 %v2636_v9, %v2409_v41  ;;  %v1757_v51 = vmul.f32 %v2640_v29, %v2407_v44  ;;  %v2410_v52 = vadd.f32 -0.28449672, %v1764_v23  ;;  %v1827_v40 = vld [vmem:[#allocation2 + $0x8] sm:$0xff]  ;;  %v1993_v44 = vld [vmem:[%s3218_s16] sm:$0xff] }
 0x7dd   : > { %v1775_v53 = vadd.f32 0.2548296, %v1771_v50  ;;  %v1761_v54 = vadd.f32 1.4214138, %v1757_v51  ;;  %v1802_v56 = vsub.f32 1.0, %v1798_v48  ;;  %v1772_v57 = vmul.f32 %v2638_v6, %v2410_v52 }
 0x7df   : > { %v1779_v61 = vmul.f32 %v2636_v9, %v1775_v53  ;;  %v1765_v62 = vmul.f32 %v2640_v29, %v1761_v54  ;;  %v1776_v63 = vadd.f32 0.2548296, %v1772_v57  ;;  %v1810_v30 = vsub.f32 0.0, %v1802_v56  ;;  %v2648_v9 = vpop.eup %2647 }
 0x7e1   : > { %v1799_v1 = vmul.f32 %v2644_v58, %v1779_v61  ;;  %v2411_v3 = vadd.f32 -0.28449672, %v1765_v62  ;;  %v1780_v5 = vmul.f32 %v2638_v6, %v1776_v63  ;;  %v1814_v13 = vsel %vm1806_vm6, %v1810_v30, %v1802_v56 }
 0x7e2   : > { %v1818_v18 = vadd.f32 1.0, %v1814_v13  ;;  %v1722_v6 = vmul.f32 0.5, %v3101_v28  ;;  %v1725_v28 = vmul.f32 0.5, %v3126_v55 }
 0x7e3   : > { %v1803_v7 = vsub.f32 1.0, %v1799_v1  ;;  %v1773_v8 = vmul.f32 %v2640_v29, %v2411_v3  ;;  %v1800_v10 = vmul.f32 %v2646_v0, %v1780_v5 }
 0x7e4   : > { %v1822_v24 = vmul.f32 %v1818_v18, %v1722_v6 }
 0x7e5   : > { %v1777_v11 = vadd.f32 0.2548296, %v1773_v8  ;;  %v1804_v14 = vsub.f32 1.0, %v1800_v10  ;;  %v1811_v15 = vsub.f32 0.0, %v1803_v7 }
 0x7e7   : > { %v1781_v16 = vmul.f32 %v2640_v29, %v1777_v11  ;;  %v1812_v17 = vsub.f32 0.0, %v1804_v14  ;;  %v1815_v21 = vsel %vm1807_vm8, %v1811_v15, %v1803_v7  ;;  %v1723_v29 = vmul.f32 0.5, %v3110_v42  ;;  %v1826_v42 = vld [vmem:[#allocation2] sm:$0xff] }
 0x7e8   : > { %v1819_v4 = vadd.f32 1.0, %v1815_v21 }
 0x7e9   : > { %v1801_v19 = vmul.f32 %v2648_v9, %v1781_v16  ;;  %v1816_v20 = vsel %vm1808_vm7, %v1812_v17, %v1804_v14 }
 0x7ea   : > { %v1820_v35 = vadd.f32 1.0, %v1816_v20  ;;  %v1823_v31 = vmul.f32 %v1819_v4, %v1723_v29 }
 0x7eb   : > { %v1805_v2 = vsub.f32 1.0, %v1801_v19 }
 0x7ec   : > { %v1824_v25 = vmul.f32 %v1820_v35, %v1724_v22 }
 0x7ed   : > { %v1813_v26 = vsub.f32 0.0, %v1805_v2 }
 0x7ee   : > { %v1828_v27 = vpack.c.bf16 %v1824_v25, %v1822_v24 }
 0x7ef   : > { %v1817_v49 = vsel %vm1809_vm9, %v1813_v26, %v1805_v2 }
 0x7f0   : > { %v1821_v46 = vadd.f32 1.0, %v1817_v49  ;;  %1966 = vmatmul.bf16.vlgmr.msrb.gmra.mxu3 %v1828_v27 }
 0x7f2   : > { %v1825_v33 = vmul.f32 %v1821_v46, %v1725_v28 }
 0x7f4   : > { %v1829_v47 = vpack.c.bf16 %v1825_v33, %v1823_v31 }
 0x7f6   : > { %1980 = vmatmul.bf16.vlgmr.msra.gmra.mxu0 %v1829_v47 }
 0x873   : > { %v1981_v60 = vpop.f32.mrf.mxu0  ;;  %v1967_v36 = vpop.f32.mrf.mxu3 }
 0x874   : > { %v1982_v37 = vadd.f32 %v1981_v60, %v1967_v36 }
 0x876   : > { %v1986_v55 = vadd.f32 %v1982_v37, %v1826_v42 }
 0x878   : > { %1988 = vst.msk [vmem:[#allocation2] sm:$0xff] %vm808_vm1, %v1986_v55 }
 0x87b   : > { %v1983_v38 = vpop.f32.mrf.mxu0  ;;  %v1969_v39 = vpop.f32.mrf.mxu3 }
 0x87c   : > { %v1984_v41 = vadd.f32 %v1983_v38, %v1969_v39 }
 0x87e   : > { %v1987_v43 = vadd.f32 %v1984_v41, %v1827_v40 }
 0x87f   : > { %v1995_v45 = vld [vmem:[#allocation2] sm:$0xff] }
 0x880   : > { %v1997_v23 = vadd.f32 %v1995_v45, %v1993_v44  ;;  %1989 = vst.msk [vmem:[#allocation2 + $0x8] sm:$0xff] %vm808_vm1, %v1987_v43 }
 0x884   : > { %2002 = sbr.rel (%p2476_p6) target bundleno = 2187 (0x88b), region = 100 }
 0x887   : > { %v1996_v48 = vld [vmem:[#allocation2 + $0x8] sm:$0xff] }
 0x888   : > { %v1998_v50 = vadd.f32 %v1996_v48, %v1994_v32 }
 0x889   : > { %2003 = vst.msk [vmem:[%s3218_s16] sm:$0xff] %vm808_vm1, %v1997_v23 }
 0x88a   : > { %2004 = vst.msk [vmem:[%s3218_s16 + $0x8] sm:$0xff] %vm808_vm1, %v1998_v50 }
 0x88b PF: > { %p2477_p7 = scmp.ne.s32.totalorder %s2669_s21, 1 }
 0x88c   : > { %s3245_s23 = sld [smem:[#allocation13_spill]] (!%p2477_p7) }
 0x88d   : > { %2008 = sbr.rel (%p2477_p7) target bundleno = 2471 (0x9a7), region = 104  ;;  %s3246_s22 = sld [smem:[#allocation14_spill]] (!%p2477_p7) }
 0x892   : > { %v2011_v51 = vsel %vm808_vm1, %v1997_v23, 0.0  ;;  %v2014_v52 = vsel %vm808_vm1, %v1998_v50, 0.0  ;;  %v2649_v18 = vld [vmem:[%s3245_s23] ss:$0 sm:$0xff] }
 0x893   : > { %2012 = vadd.xlane.f32.xlu0 %v2011_v51  ;;  %v2650_v20 = vld [vmem:[%s3246_s22] ss:$0 sm:$0xff] }
 0x89b   : > { %2015 = vadd.xlane.f32.xlu0 %v2014_v52 }
 0x906   : > { %v2013_v53 = vpop.xlane.xlu0 %2012 }
 0x907   : > { %v2024_v54 = vmul.f32 %v2013_v53, %v2881_v12 }
 0x909   : > { %v2026_v56 = vsub.f32 %v1997_v23, %v2024_v54 }
 0x90b   : > { %v2028_v57 = vmul.f32 %v2026_v56, %v2026_v56 }
 0x90d   : > { %v2030_v59 = vsel %vm808_vm1, %v2028_v57, 0.0 }
 0x90e   : > { %2031 = vadd.xlane.f32.xlu1 %v2030_v59  ;;  %v2016_v61 = vpop.xlane.xlu0 %2015 }
 0x90f   : > { %v2025_v62 = vmul.f32 %v2016_v61, %v2881_v12 }
 0x911   : > { %v2027_v58 = vsub.f32 %v1998_v50, %v2025_v62 }
 0x913   : > { %v2029_v63 = vmul.f32 %v2027_v58, %v2027_v58 }
 0x915   : > { %v2033_v1 = vsel %vm808_vm1, %v2029_v63, 0.0 }
 0x916   : > { %2034 = vadd.xlane.f32.xlu1 %v2033_v1 }
 0x981   : > { %v2032_v3 = vpop.xlane.xlu1 %2031 }
 0x982   : > { %v2036_v30 = vmul.f32 %v2032_v3, %v2881_v12 }
 0x984   : > { %v2038_v5 = vadd.f32 1e-05, %v2036_v30 }
 0x986   : > { %2651 = vrsqrt.f32 %v2038_v5  ;;  %vm2046_vm11 = vweird.f32 %v2038_v5 }
 0x989   : > { %v2035_v0 = vpop.xlane.xlu1 %2034 }
 0x98a   : > { %v2037_v7 = vmul.f32 %v2035_v0, %v2881_v12 }
 0x98c   : > { %v2652_v8 = vpop.eup %2651  ;;  %v2039_v10 = vadd.f32 1e-05, %v2037_v7 }
 0x98d   : > { %v2041_v11 = vmul.f32 %v2652_v8, %v2038_v5  ;;  %vm2047_vm10 = vweird.f32 %v2652_v8 }
 0x98e   : > { %2653 = vrsqrt.f32 %v2039_v10  ;;  %vm2048_vm12 = vmor %vm2046_vm11, %vm2047_vm10  ;;  %vm2056_vm14 = vweird.f32 %v2039_v10 }
 0x98f   : > { %v2042_v13 = vmul.f32 %v2652_v8, %v2041_v11 }
 0x991   : > { %v2043_v14 = vmul.f32 0.5, %v2042_v13 }
 0x993   : > { %v2044_v15 = vsub.f32 1.5, %v2043_v14 }
 0x994   : > { %v2654_v16 = vpop.eup %2653 }
 0x995   : > { %v2045_v9 = vmul.f32 %v2652_v8, %v2044_v15  ;;  %v2051_v17 = vmul.f32 %v2654_v16, %v2039_v10  ;;  %vm2057_vm13 = vweird.f32 %v2654_v16 }
 0x996   : > { %vm2058_vm15 = vmor %vm2056_vm14, %vm2057_vm13 }
 0x997   : > { %v2049_v19 = vsel %vm2048_vm12, %v2652_v8, %v2045_v9  ;;  %v2052_v6 = vmul.f32 %v2654_v16, %v2051_v17 }
 0x998   : > { %v2060_v12 = vmul.f32 %v2049_v19, %v2026_v56 }
 0x999   : > { %v2053_v21 = vmul.f32 0.5, %v2052_v6 }
 0x99a   : > { %v2065_v22 = vmul.f32 %v2649_v18, %v2060_v12 }
 0x99b   : > { %v2054_v35 = vsub.f32 1.5, %v2053_v21 }
 0x99c   : > { %v2070_v2 = vadd.f32 %v2650_v20, %v2065_v22 }
 0x99d   : > { %v2055_v24 = vmul.f32 %v2654_v16, %v2054_v35 }
 0x99e   : > { %2072 = vst.msk [vmem:[%s3218_s16] sm:$0xff] %vm808_vm1, %v2070_v2 }
 0x99f   : > { %v2059_v25 = vsel %vm2058_vm15, %v2654_v16, %v2055_v24 }
 0x9a0   : > { %v2061_v26 = vmul.f32 %v2059_v25, %v2027_v58 }
 0x9a2   : > { %v2066_v4 = vmul.f32 %v2649_v18, %v2061_v26 }
 0x9a4   : > { %v2071_v27 = vadd.f32 %v2650_v20, %v2066_v4 }
 0x9a6   : > { %2073 = vst.msk [vmem:[%s3218_s16 + $0x8] sm:$0xff] %vm808_vm1, %v2071_v27 }
 0x9a7 PF: > { %s3247_s17 = sld [smem:[#allocation5_spill]] }
 0x9a8   : > { %s3248_s21 = sld [smem:[#allocation4_spill]] }
 0x9a9   : > { %s3249_s22 = sld [smem:[#allocation6_spill]] }
 0x9ad   : > { %s26_s23 = sadd.s32 1, %s3247_s17  }
 0x9ae   : > { %p23_p8 = scmp.ge.s32.totalorder %s26_s23, 4  }
 0x9b0   :  { %25 = sbr.rel (!%p23_p8) target bundleno = 9 (0x9), region = 170 }

</bundles_post_ra>
